<compile_context>
chip_gen: v7x
topology: tpu7x:2x2x1
jax: 0.10.0
libtpu: 0.0.40
codegen_flags: <defaults>
</compile_context>

<pallas_src>
import numpy as np
import jax
import jax.numpy as jnp
from jax.experimental import pallas as pl
from jax.experimental.pallas import tpu as pltpu

INPUT_SIZE = 1
HIDDEN = 8
NUM_LAYERS = 5
SEQ_LEN = 30                       # implied by fc1 in_features = 240 = SEQ_LEN * HIDDEN
FC1_OUT = 64

ZW = HIDDEN * (NUM_LAYERS + 1)     # 48-lane state: [x_t | h_0 .. h_{L-1}]
PA_ROWS = ZW + 8                   # 56: banded weight (48 rows) + bias row (8-aligned pad)
B1_ROW = SEQ_LEN * HIDDEN          # 240: row of b1 inside the fc-params buffer
W2_ROW = 248                       # 8-aligned row of w2 inside the fc-params buffer
PB_ROWS = 256


def rnn_mlp_kernel(xs_ref, pa_ref, pb_ref, b2_ref, out_ref):
    T, L, H = SEQ_LEN, NUM_LAYERS, HIDDEN
    B = out_ref.shape[0]

    # One-time parameter loads; everything below stays vreg-resident.
    w_band = pa_ref[0:ZW, :]                 # (48, 48) banded [W_ih^T ; W_hh^T] blocks
    b_band = pa_ref[ZW:ZW + 1, :]            # (1, 48)  stacked b_ih + b_hh per layer
    b1 = pb_ref[B1_ROW:B1_ROW + 1, :]        # (1, 64)
    w2 = pb_ref[W2_ROW:W2_ROW + 1, :]        # (1, 64)
    b2 = b2_ref[0]                           # scalar from SMEM

    lane = jax.lax.broadcasted_iota(jnp.int32, (1, ZW), 1)
    xmask = lane < H                         # lanes [0,8): x_t slot of the state

    # State z: lanes [0,8) = x_t, lanes [(l+1)*H, (l+2)*H) = h_l.
    # xs[0] carries both x_0 and the flattened initial hidden states.
    z = xs_ref[0]                            # (B, 48)
    acc = jnp.zeros((B, FC1_OUT), jnp.float32)   # on-the-fly fc1 accumulator

    # Wavefront schedule: diagonal d updates layer l at time t = d - l for every valid
    # (l, t).  All updates of a diagonal read the previous diagonal's state, so one
    # banded matmul + one tanh performs the whole diagonal; dependent steps = T + L - 1.
    for d in range(T + L - 1):
        l_lo = max(0, d - T + 1)
        l_hi = min(L - 1, d)

        znew = jnp.tanh(jnp.dot(z, w_band, preferred_element_type=jnp.float32) + b_band)

        # Last layer just produced its output for time t: fold it into fc1 right away.
        # (Off the recurrence critical path; hides in MXU slack / MRB accumulation.)
        if l_hi == L - 1:
            t = d - (L - 1)
            acc = acc + jnp.dot(znew[:, L * H:ZW],
                                pb_ref[t * H:(t + 1) * H, :],
                                preferred_element_type=jnp.float32)

        # Commit only the active layers' lanes (warmup/cooldown); full diagonals need
        # no hidden-lane mask at all.
        if l_lo == 0 and l_hi == L - 1:
            zc = znew
        else:
            hmask = (lane >= (1 + l_lo) * H) & (lane < (2 + l_hi) * H)
            zc = jnp.where(hmask, znew, z)

        # Load x_{d+1} into the x lanes for the next diagonal (don't-care once d+1 >= T).
        if d + 1 < T:
            z = jnp.where(xmask, xs_ref[d + 1], zc)
        else:
            z = zc

    # fc1 bias + tanh, then fc2 on VPU (broadcast mul) + XLU (lane reduction).
    y = jnp.tanh(acc + b1)                                        # (B, 64)
    out_ref[...] = jnp.sum(y * w2, axis=-1, keepdims=True) + b2   # (B, 1)


def pack_params(raw):
    """Pack raw (PyTorch-layout) params into the kernel's fused buffers."""
    layers, w1, b1, w2, b2 = raw
    H = HIDDEN

    # Banded weight: for layer l (output cols [(l+1)*H, (l+2)*H)):
    #   rows [l*H, (l+1)*H)       <- W_ih_l^T   (input = x_t for l=0, h_{l-1} otherwise)
    #   rows [(l+1)*H, (l+2)*H)   <- W_hh_l^T   (recurrent input h_l)
    w_band = np.zeros((ZW, ZW), np.float32)
    b_band = np.zeros((ZW,), np.float32)
    for l, (w_ih, w_hh, b_ih, b_hh) in enumerate(layers):
        in_dim = w_ih.shape[1]
        c0 = (l + 1) * H
        w_band[l * H: l * H + in_dim, c0:c0 + H] = np.asarray(w_ih).T
        w_band[(l + 1) * H:(l + 2) * H, c0:c0 + H] = np.asarray(w_hh).T
        b_band[c0:c0 + H] = np.asarray(b_ih) + np.asarray(b_hh)

    pa = np.zeros((PA_ROWS, ZW), np.float32)
    pa[0:ZW, :] = w_band
    pa[ZW, :] = b_band

    pb = np.zeros((PB_ROWS, FC1_OUT), np.float32)
    pb[0:SEQ_LEN * HIDDEN, :] = np.asarray(w1).T     # (240, 64): x_flat @ w1^T
    pb[B1_ROW, :] = np.asarray(b1)
    pb[W2_ROW, :] = np.asarray(w2)[0]                # fc2 weight row (64,)

    b2s = np.asarray(b2, np.float32).reshape(1)
    return jnp.asarray(pa), jnp.asarray(pb), jnp.asarray(b2s)


def rnn_forward(x, h0, packed):
    pa, pb, b2s = packed
    B = x.shape[0]
    assert x.shape == (B, SEQ_LEN, INPUT_SIZE)
    assert h0.shape == (NUM_LAYERS, B, HIDDEN)

    # Pad batch to a multiple of 8 so every vreg sublane is occupied.
    B_pad = max(8, -(-B // 8) * 8)

    # Time-major x placed in the first INPUT_SIZE lanes of the 48-lane state layout.
    x_tm = jnp.transpose(x, (1, 0, 2))                               # (T, B, 1)
    xs = jnp.zeros((SEQ_LEN, B_pad, ZW), jnp.float32)
    xs = xs.at[:, :B, :INPUT_SIZE].set(x_tm)
    # Embed the initial hidden states into slot 0 (the kernel's initial state load).
    h0_flat = jnp.transpose(h0, (1, 0, 2)).reshape(B, NUM_LAYERS * HIDDEN)
    xs = xs.at[0, :B, HIDDEN:].set(h0_flat)

    out = pl.pallas_call(
        rnn_mlp_kernel,
        out_shape=jax.ShapeDtypeStruct((B_pad, 1), jnp.float32),
        in_specs=[
            pl.BlockSpec(memory_space=pltpu.MemorySpace.VMEM),   # xs  (x sequence + h0)
            pl.BlockSpec(memory_space=pltpu.MemorySpace.VMEM),   # pa  (banded RNN params)
            pl.BlockSpec(memory_space=pltpu.MemorySpace.VMEM),   # pb  (fc1 / fc2 params)
            pl.BlockSpec(memory_space=pltpu.MemorySpace.SMEM),   # b2  scalar
        ],
        out_specs=pl.BlockSpec(memory_space=pltpu.MemorySpace.VMEM),
    )(xs, pa, pb, b2s)

    return out[:B, 0]                       # torch.flatten -> (B,)


def init_params(key):
    """Raw parameters in PyTorch layout."""
    ks = jax.random.split(key, 4 * NUM_LAYERS + 4)
    s = 1.0 / np.sqrt(HIDDEN)
    layers = []
    idx = 0
    for l in range(NUM_LAYERS):
        in_dim = INPUT_SIZE if l == 0 else HIDDEN
        w_ih = jax.random.uniform(ks[idx], (HIDDEN, in_dim), jnp.float32, -s, s); idx += 1
        w_hh = jax.random.uniform(ks[idx], (HIDDEN, HIDDEN), jnp.float32, -s, s); idx += 1
        b_ih = jax.random.uniform(ks[idx], (HIDDEN,), jnp.float32, -s, s); idx += 1
        b_hh = jax.random.uniform(ks[idx], (HIDDEN,), jnp.float32, -s, s); idx += 1
        layers.append((w_ih, w_hh, b_ih, b_hh))
    s1 = 1.0 / np.sqrt(SEQ_LEN * HIDDEN)
    w1 = jax.random.uniform(ks[idx], (FC1_OUT, SEQ_LEN * HIDDEN), jnp.float32, -s1, s1); idx += 1
    b1 = jax.random.uniform(ks[idx], (FC1_OUT,), jnp.float32, -s1, s1); idx += 1
    s2 = 1.0 / np.sqrt(FC1_OUT)
    w2 = jax.random.uniform(ks[idx], (1, FC1_OUT), jnp.float32, -s2, s2); idx += 1
    b2 = jax.random.uniform(ks[idx], (1,), jnp.float32, -s2, s2); idx += 1
    return (layers, w1, b1, w2, b2)


def reference_forward(x, h0, raw):
    """Plain-JAX reference with PyTorch semantics (correctness check)."""
    layers, w1, b1, w2, b2 = raw
    B = x.shape[0]
    cur = x                                                  # (B, T, in)
    for l, (w_ih, w_hh, b_ih, b_hh) in enumerate(layers):
        h = h0[l]
        outs = []
        for t in range(SEQ_LEN):
            h = jnp.tanh(cur[:, t, :] @ w_ih.T + h @ w_hh.T + b_ih + b_hh)
            outs.append(h)
        cur = jnp.stack(outs, axis=1)                        # (B, T, H)
    flat = cur.reshape(B, SEQ_LEN * HIDDEN)                  # torch.reshape(x, (B, -1))
    y = jnp.tanh(flat @ w1.T + b1)
    z = y @ w2.T + b2
    return z.reshape(-1)


if __name__ == "__main__":
    key = jax.random.PRNGKey(0)
    kx, kh, kp = jax.random.split(key, 3)
    B = 4
    x = jax.random.normal(kx, (B, SEQ_LEN, INPUT_SIZE), jnp.float32)
    h0 = jax.random.normal(kh, (NUM_LAYERS, B, HIDDEN), jnp.float32)
    raw = init_params(kp)
    packed = pack_params(raw)

    out = jax.block_until_ready(rnn_forward(x, h0, packed))
    ref = jax.block_until_ready(reference_forward(x, h0, raw))

    assert out.shape == (B,)
    np.testing.assert_allclose(np.asarray(out), np.asarray(ref), rtol=2e-3, atol=2e-3)
    print("KERNEL_OK")
</pallas_src>

<mosaic_0001>
module attributes {stable_mosaic.version = 11 : i64} {
  func.func @rnn_mlp_kernel(%arg0: memref<30x8x48xf32, #tpu.memory_space<vmem>>, %arg1: memref<56x48xf32, #tpu.memory_space<vmem>>, %arg2: memref<256x64xf32, #tpu.memory_space<vmem>>, %arg3: memref<1xf32, #tpu.memory_space<smem>>, %arg4: memref<8x1xf32, #tpu.memory_space<vmem>>) attributes {dimension_semantics = [], scalar_prefetch = 0 : i64, scratch_operands = 0 : i64, tpu.core_type = #tpu.core_type<tc>} {
    %c0 = arith.constant 0 : index
    %c0_0 = arith.constant 0 : index
    %0 = vector.load %arg1[%c0, %c0_0] : memref<56x48xf32, #tpu.memory_space<vmem>>, vector<48x48xf32>
    %c48 = arith.constant 48 : index
    %c0_1 = arith.constant 0 : index
    %1 = vector.load %arg1[%c48, %c0_1] : memref<56x48xf32, #tpu.memory_space<vmem>>, vector<1x48xf32>
    %c240 = arith.constant 240 : index
    %c0_2 = arith.constant 0 : index
    %2 = vector.load %arg2[%c240, %c0_2] : memref<256x64xf32, #tpu.memory_space<vmem>>, vector<1x64xf32>
    %c248 = arith.constant 248 : index
    %c0_3 = arith.constant 0 : index
    %3 = vector.load %arg2[%c248, %c0_3] : memref<256x64xf32, #tpu.memory_space<vmem>>, vector<1x64xf32>
    %c0_4 = arith.constant 0 : index
    %4 = memref.load %arg3[%c0_4] : memref<1xf32, #tpu.memory_space<smem>>
    %5 = tpu.iota {dimensions = array<i32: 1>} : vector<1x48xi32>
    %c8_i32 = arith.constant 8 : i32
    %6 = vector.broadcast %c8_i32 : i32 to vector<1x48xi32>
    %7 = arith.cmpi slt, %5, %6 : vector<1x48xi32>
    %c0_5 = arith.constant 0 : index
    %c0_6 = arith.constant 0 : index
    %c0_7 = arith.constant 0 : index
    %8 = vector.load %arg0[%c0_5, %c0_6, %c0_7] : memref<30x8x48xf32, #tpu.memory_space<vmem>>, vector<1x8x48xf32>
    %9 = vector.shape_cast %8 : vector<1x8x48xf32> to vector<8x48xf32>
    %cst = arith.constant 0.000000e+00 : f32
    %10 = vector.broadcast %cst : f32 to vector<8x64xf32>
    %cst_8 = arith.constant dense<0.000000e+00> : vector<8x48xf32>
    %11 = tpu.matmul %9, %0, %cst_8 {dimension_numbers = #tpu.dot_dimension_numbers<[1], [0], [0], [1], [0, 0, 1, 1], [], []>} : vector<8x48xf32>, vector<48x48xf32>, vector<8x48xf32> -> vector<8x48xf32>
    %12 = vector.broadcast %1 : vector<1x48xf32> to vector<8x48xf32>
    %13 = arith.addf %11, %12 : vector<8x48xf32>
    %14 = math.tanh %13 : vector<8x48xf32>
    %c8_i32_9 = arith.constant 8 : i32
    %15 = vector.broadcast %c8_i32_9 : i32 to vector<1x48xi32>
    %16 = arith.cmpi sge, %5, %15 : vector<1x48xi32>
    %c16_i32 = arith.constant 16 : i32
    %17 = vector.broadcast %c16_i32 : i32 to vector<1x48xi32>
    %18 = arith.cmpi slt, %5, %17 : vector<1x48xi32>
    %19 = arith.andi %16, %18 : vector<1x48xi1>
    %20 = vector.shape_cast %19 : vector<1x48xi1> to vector<1x48xi1>
    %21 = vector.broadcast %20 : vector<1x48xi1> to vector<8x48xi1>
    %22 = arith.select %21, %14, %9 : vector<8x48xi1>, vector<8x48xf32>
    %c1 = arith.constant 1 : index
    %c0_10 = arith.constant 0 : index
    %c0_11 = arith.constant 0 : index
    %23 = vector.load %arg0[%c1, %c0_10, %c0_11] : memref<30x8x48xf32, #tpu.memory_space<vmem>>, vector<1x8x48xf32>
    %24 = vector.shape_cast %23 : vector<1x8x48xf32> to vector<8x48xf32>
    %25 = vector.shape_cast %7 : vector<1x48xi1> to vector<1x48xi1>
    %26 = vector.broadcast %25 : vector<1x48xi1> to vector<8x48xi1>
    %27 = arith.select %26, %24, %22 : vector<8x48xi1>, vector<8x48xf32>
    %cst_12 = arith.constant dense<0.000000e+00> : vector<8x48xf32>
    %28 = tpu.matmul %27, %0, %cst_12 {dimension_numbers = #tpu.dot_dimension_numbers<[1], [0], [0], [1], [0, 0, 1, 1], [], []>} : vector<8x48xf32>, vector<48x48xf32>, vector<8x48xf32> -> vector<8x48xf32>
    %29 = vector.broadcast %1 : vector<1x48xf32> to vector<8x48xf32>
    %30 = arith.addf %28, %29 : vector<8x48xf32>
    %31 = math.tanh %30 : vector<8x48xf32>
    %c8_i32_13 = arith.constant 8 : i32
    %32 = vector.broadcast %c8_i32_13 : i32 to vector<1x48xi32>
    %33 = arith.cmpi sge, %5, %32 : vector<1x48xi32>
    %c24_i32 = arith.constant 24 : i32
    %34 = vector.broadcast %c24_i32 : i32 to vector<1x48xi32>
    %35 = arith.cmpi slt, %5, %34 : vector<1x48xi32>
    %36 = arith.andi %33, %35 : vector<1x48xi1>
    %37 = vector.shape_cast %36 : vector<1x48xi1> to vector<1x48xi1>
    %38 = vector.broadcast %37 : vector<1x48xi1> to vector<8x48xi1>
    %39 = arith.select %38, %31, %27 : vector<8x48xi1>, vector<8x48xf32>
    %c2 = arith.constant 2 : index
    %c0_14 = arith.constant 0 : index
    %c0_15 = arith.constant 0 : index
    %40 = vector.load %arg0[%c2, %c0_14, %c0_15] : memref<30x8x48xf32, #tpu.memory_space<vmem>>, vector<1x8x48xf32>
    %41 = vector.shape_cast %40 : vector<1x8x48xf32> to vector<8x48xf32>
    %42 = vector.shape_cast %7 : vector<1x48xi1> to vector<1x48xi1>
    %43 = vector.broadcast %42 : vector<1x48xi1> to vector<8x48xi1>
    %44 = arith.select %43, %41, %39 : vector<8x48xi1>, vector<8x48xf32>
    %cst_16 = arith.constant dense<0.000000e+00> : vector<8x48xf32>
    %45 = tpu.matmul %44, %0, %cst_16 {dimension_numbers = #tpu.dot_dimension_numbers<[1], [0], [0], [1], [0, 0, 1, 1], [], []>} : vector<8x48xf32>, vector<48x48xf32>, vector<8x48xf32> -> vector<8x48xf32>
    %46 = vector.broadcast %1 : vector<1x48xf32> to vector<8x48xf32>
    %47 = arith.addf %45, %46 : vector<8x48xf32>
    %48 = math.tanh %47 : vector<8x48xf32>
    %c8_i32_17 = arith.constant 8 : i32
    %49 = vector.broadcast %c8_i32_17 : i32 to vector<1x48xi32>
    %50 = arith.cmpi sge, %5, %49 : vector<1x48xi32>
    %c32_i32 = arith.constant 32 : i32
    %51 = vector.broadcast %c32_i32 : i32 to vector<1x48xi32>
    %52 = arith.cmpi slt, %5, %51 : vector<1x48xi32>
    %53 = arith.andi %50, %52 : vector<1x48xi1>
    %54 = vector.shape_cast %53 : vector<1x48xi1> to vector<1x48xi1>
    %55 = vector.broadcast %54 : vector<1x48xi1> to vector<8x48xi1>
    %56 = arith.select %55, %48, %44 : vector<8x48xi1>, vector<8x48xf32>
    %c3 = arith.constant 3 : index
    %c0_18 = arith.constant 0 : index
    %c0_19 = arith.constant 0 : index
    %57 = vector.load %arg0[%c3, %c0_18, %c0_19] : memref<30x8x48xf32, #tpu.memory_space<vmem>>, vector<1x8x48xf32>
    %58 = vector.shape_cast %57 : vector<1x8x48xf32> to vector<8x48xf32>
    %59 = vector.shape_cast %7 : vector<1x48xi1> to vector<1x48xi1>
    %60 = vector.broadcast %59 : vector<1x48xi1> to vector<8x48xi1>
    %61 = arith.select %60, %58, %56 : vector<8x48xi1>, vector<8x48xf32>
    %cst_20 = arith.constant dense<0.000000e+00> : vector<8x48xf32>
    %62 = tpu.matmul %61, %0, %cst_20 {dimension_numbers = #tpu.dot_dimension_numbers<[1], [0], [0], [1], [0, 0, 1, 1], [], []>} : vector<8x48xf32>, vector<48x48xf32>, vector<8x48xf32> -> vector<8x48xf32>
    %63 = vector.broadcast %1 : vector<1x48xf32> to vector<8x48xf32>
    %64 = arith.addf %62, %63 : vector<8x48xf32>
    %65 = math.tanh %64 : vector<8x48xf32>
    %c8_i32_21 = arith.constant 8 : i32
    %66 = vector.broadcast %c8_i32_21 : i32 to vector<1x48xi32>
    %67 = arith.cmpi sge, %5, %66 : vector<1x48xi32>
    %c40_i32 = arith.constant 40 : i32
    %68 = vector.broadcast %c40_i32 : i32 to vector<1x48xi32>
    %69 = arith.cmpi slt, %5, %68 : vector<1x48xi32>
    %70 = arith.andi %67, %69 : vector<1x48xi1>
    %71 = vector.shape_cast %70 : vector<1x48xi1> to vector<1x48xi1>
    %72 = vector.broadcast %71 : vector<1x48xi1> to vector<8x48xi1>
    %73 = arith.select %72, %65, %61 : vector<8x48xi1>, vector<8x48xf32>
    %c4 = arith.constant 4 : index
    %c0_22 = arith.constant 0 : index
    %c0_23 = arith.constant 0 : index
    %74 = vector.load %arg0[%c4, %c0_22, %c0_23] : memref<30x8x48xf32, #tpu.memory_space<vmem>>, vector<1x8x48xf32>
    %75 = vector.shape_cast %74 : vector<1x8x48xf32> to vector<8x48xf32>
    %76 = vector.shape_cast %7 : vector<1x48xi1> to vector<1x48xi1>
    %77 = vector.broadcast %76 : vector<1x48xi1> to vector<8x48xi1>
    %78 = arith.select %77, %75, %73 : vector<8x48xi1>, vector<8x48xf32>
    %cst_24 = arith.constant dense<0.000000e+00> : vector<8x48xf32>
    %79 = tpu.matmul %78, %0, %cst_24 {dimension_numbers = #tpu.dot_dimension_numbers<[1], [0], [0], [1], [0, 0, 1, 1], [], []>} : vector<8x48xf32>, vector<48x48xf32>, vector<8x48xf32> -> vector<8x48xf32>
    %80 = vector.broadcast %1 : vector<1x48xf32> to vector<8x48xf32>
    %81 = arith.addf %79, %80 : vector<8x48xf32>
    %82 = math.tanh %81 : vector<8x48xf32>
    %83 = vector.extract_strided_slice %82 {offsets = [0, 40], sizes = [8, 8], strides = [1, 1]} : vector<8x48xf32> to vector<8x8xf32>
    %c0_25 = arith.constant 0 : index
    %c0_26 = arith.constant 0 : index
    %84 = vector.load %arg2[%c0_25, %c0_26] : memref<256x64xf32, #tpu.memory_space<vmem>>, vector<8x64xf32>
    %cst_27 = arith.constant dense<0.000000e+00> : vector<8x64xf32>
    %85 = tpu.matmul %83, %84, %cst_27 {dimension_numbers = #tpu.dot_dimension_numbers<[1], [0], [0], [1], [0, 0, 1, 1], [], []>} : vector<8x8xf32>, vector<8x64xf32>, vector<8x64xf32> -> vector<8x64xf32>
    %86 = arith.addf %10, %85 : vector<8x64xf32>
    %c5 = arith.constant 5 : index
    %c0_28 = arith.constant 0 : index
    %c0_29 = arith.constant 0 : index
    %87 = vector.load %arg0[%c5, %c0_28, %c0_29] : memref<30x8x48xf32, #tpu.memory_space<vmem>>, vector<1x8x48xf32>
    %88 = vector.shape_cast %87 : vector<1x8x48xf32> to vector<8x48xf32>
    %89 = vector.shape_cast %7 : vector<1x48xi1> to vector<1x48xi1>
    %90 = vector.broadcast %89 : vector<1x48xi1> to vector<8x48xi1>
    %91 = arith.select %90, %88, %82 : vector<8x48xi1>, vector<8x48xf32>
    %cst_30 = arith.constant dense<0.000000e+00> : vector<8x48xf32>
    %92 = tpu.matmul %91, %0, %cst_30 {dimension_numbers = #tpu.dot_dimension_numbers<[1], [0], [0], [1], [0, 0, 1, 1], [], []>} : vector<8x48xf32>, vector<48x48xf32>, vector<8x48xf32> -> vector<8x48xf32>
    %93 = vector.broadcast %1 : vector<1x48xf32> to vector<8x48xf32>
    %94 = arith.addf %92, %93 : vector<8x48xf32>
    %95 = math.tanh %94 : vector<8x48xf32>
    %96 = vector.extract_strided_slice %95 {offsets = [0, 40], sizes = [8, 8], strides = [1, 1]} : vector<8x48xf32> to vector<8x8xf32>
    %c8 = arith.constant 8 : index
    %c0_31 = arith.constant 0 : index
    %97 = vector.load %arg2[%c8, %c0_31] : memref<256x64xf32, #tpu.memory_space<vmem>>, vector<8x64xf32>
    %cst_32 = arith.constant dense<0.000000e+00> : vector<8x64xf32>
    %98 = tpu.matmul %96, %97, %cst_32 {dimension_numbers = #tpu.dot_dimension_numbers<[1], [0], [0], [1], [0, 0, 1, 1], [], []>} : vector<8x8xf32>, vector<8x64xf32>, vector<8x64xf32> -> vector<8x64xf32>
    %99 = arith.addf %86, %98 : vector<8x64xf32>
    %c6 = arith.constant 6 : index
    %c0_33 = arith.constant 0 : index
    %c0_34 = arith.constant 0 : index
    %100 = vector.load %arg0[%c6, %c0_33, %c0_34] : memref<30x8x48xf32, #tpu.memory_space<vmem>>, vector<1x8x48xf32>
    %101 = vector.shape_cast %100 : vector<1x8x48xf32> to vector<8x48xf32>
    %102 = vector.shape_cast %7 : vector<1x48xi1> to vector<1x48xi1>
    %103 = vector.broadcast %102 : vector<1x48xi1> to vector<8x48xi1>
    %104 = arith.select %103, %101, %95 : vector<8x48xi1>, vector<8x48xf32>
    %cst_35 = arith.constant dense<0.000000e+00> : vector<8x48xf32>
    %105 = tpu.matmul %104, %0, %cst_35 {dimension_numbers = #tpu.dot_dimension_numbers<[1], [0], [0], [1], [0, 0, 1, 1], [], []>} : vector<8x48xf32>, vector<48x48xf32>, vector<8x48xf32> -> vector<8x48xf32>
    %106 = vector.broadcast %1 : vector<1x48xf32> to vector<8x48xf32>
    %107 = arith.addf %105, %106 : vector<8x48xf32>
    %108 = math.tanh %107 : vector<8x48xf32>
    %109 = vector.extract_strided_slice %108 {offsets = [0, 40], sizes = [8, 8], strides = [1, 1]} : vector<8x48xf32> to vector<8x8xf32>
    %c16 = arith.constant 16 : index
    %c0_36 = arith.constant 0 : index
    %110 = vector.load %arg2[%c16, %c0_36] : memref<256x64xf32, #tpu.memory_space<vmem>>, vector<8x64xf32>
    %cst_37 = arith.constant dense<0.000000e+00> : vector<8x64xf32>
    %111 = tpu.matmul %109, %110, %cst_37 {dimension_numbers = #tpu.dot_dimension_numbers<[1], [0], [0], [1], [0, 0, 1, 1], [], []>} : vector<8x8xf32>, vector<8x64xf32>, vector<8x64xf32> -> vector<8x64xf32>
    %112 = arith.addf %99, %111 : vector<8x64xf32>
    %c7 = arith.constant 7 : index
    %c0_38 = arith.constant 0 : index
    %c0_39 = arith.constant 0 : index
    %113 = vector.load %arg0[%c7, %c0_38, %c0_39] : memref<30x8x48xf32, #tpu.memory_space<vmem>>, vector<1x8x48xf32>
    %114 = vector.shape_cast %113 : vector<1x8x48xf32> to vector<8x48xf32>
    %115 = vector.shape_cast %7 : vector<1x48xi1> to vector<1x48xi1>
    %116 = vector.broadcast %115 : vector<1x48xi1> to vector<8x48xi1>
    %117 = arith.select %116, %114, %108 : vector<8x48xi1>, vector<8x48xf32>
    %cst_40 = arith.constant dense<0.000000e+00> : vector<8x48xf32>
    %118 = tpu.matmul %117, %0, %cst_40 {dimension_numbers = #tpu.dot_dimension_numbers<[1], [0], [0], [1], [0, 0, 1, 1], [], []>} : vector<8x48xf32>, vector<48x48xf32>, vector<8x48xf32> -> vector<8x48xf32>
    %119 = vector.broadcast %1 : vector<1x48xf32> to vector<8x48xf32>
    %120 = arith.addf %118, %119 : vector<8x48xf32>
    %121 = math.tanh %120 : vector<8x48xf32>
    %122 = vector.extract_strided_slice %121 {offsets = [0, 40], sizes = [8, 8], strides = [1, 1]} : vector<8x48xf32> to vector<8x8xf32>
    %c24 = arith.constant 24 : index
    %c0_41 = arith.constant 0 : index
    %123 = vector.load %arg2[%c24, %c0_41] : memref<256x64xf32, #tpu.memory_space<vmem>>, vector<8x64xf32>
    %cst_42 = arith.constant dense<0.000000e+00> : vector<8x64xf32>
    %124 = tpu.matmul %122, %123, %cst_42 {dimension_numbers = #tpu.dot_dimension_numbers<[1], [0], [0], [1], [0, 0, 1, 1], [], []>} : vector<8x8xf32>, vector<8x64xf32>, vector<8x64xf32> -> vector<8x64xf32>
    %125 = arith.addf %112, %124 : vector<8x64xf32>
    %c8_43 = arith.constant 8 : index
    %c0_44 = arith.constant 0 : index
    %c0_45 = arith.constant 0 : index
    %126 = vector.load %arg0[%c8_43, %c0_44, %c0_45] : memref<30x8x48xf32, #tpu.memory_space<vmem>>, vector<1x8x48xf32>
    %127 = vector.shape_cast %126 : vector<1x8x48xf32> to vector<8x48xf32>
    %128 = vector.shape_cast %7 : vector<1x48xi1> to vector<1x48xi1>
    %129 = vector.broadcast %128 : vector<1x48xi1> to vector<8x48xi1>
    %130 = arith.select %129, %127, %121 : vector<8x48xi1>, vector<8x48xf32>
    %cst_46 = arith.constant dense<0.000000e+00> : vector<8x48xf32>
    %131 = tpu.matmul %130, %0, %cst_46 {dimension_numbers = #tpu.dot_dimension_numbers<[1], [0], [0], [1], [0, 0, 1, 1], [], []>} : vector<8x48xf32>, vector<48x48xf32>, vector<8x48xf32> -> vector<8x48xf32>
    %132 = vector.broadcast %1 : vector<1x48xf32> to vector<8x48xf32>
    %133 = arith.addf %131, %132 : vector<8x48xf32>
    %134 = math.tanh %133 : vector<8x48xf32>
    %135 = vector.extract_strided_slice %134 {offsets = [0, 40], sizes = [8, 8], strides = [1, 1]} : vector<8x48xf32> to vector<8x8xf32>
    %c32 = arith.constant 32 : index
    %c0_47 = arith.constant 0 : index
    %136 = vector.load %arg2[%c32, %c0_47] : memref<256x64xf32, #tpu.memory_space<vmem>>, vector<8x64xf32>
    %cst_48 = arith.constant dense<0.000000e+00> : vector<8x64xf32>
    %137 = tpu.matmul %135, %136, %cst_48 {dimension_numbers = #tpu.dot_dimension_numbers<[1], [0], [0], [1], [0, 0, 1, 1], [], []>} : vector<8x8xf32>, vector<8x64xf32>, vector<8x64xf32> -> vector<8x64xf32>
    %138 = arith.addf %125, %137 : vector<8x64xf32>
    %c9 = arith.constant 9 : index
    %c0_49 = arith.constant 0 : index
    %c0_50 = arith.constant 0 : index
    %139 = vector.load %arg0[%c9, %c0_49, %c0_50] : memref<30x8x48xf32, #tpu.memory_space<vmem>>, vector<1x8x48xf32>
    %140 = vector.shape_cast %139 : vector<1x8x48xf32> to vector<8x48xf32>
    %141 = vector.shape_cast %7 : vector<1x48xi1> to vector<1x48xi1>
    %142 = vector.broadcast %141 : vector<1x48xi1> to vector<8x48xi1>
    %143 = arith.select %142, %140, %134 : vector<8x48xi1>, vector<8x48xf32>
    %cst_51 = arith.constant dense<0.000000e+00> : vector<8x48xf32>
    %144 = tpu.matmul %143, %0, %cst_51 {dimension_numbers = #tpu.dot_dimension_numbers<[1], [0], [0], [1], [0, 0, 1, 1], [], []>} : vector<8x48xf32>, vector<48x48xf32>, vector<8x48xf32> -> vector<8x48xf32>
    %145 = vector.broadcast %1 : vector<1x48xf32> to vector<8x48xf32>
    %146 = arith.addf %144, %145 : vector<8x48xf32>
    %147 = math.tanh %146 : vector<8x48xf32>
    %148 = vector.extract_strided_slice %147 {offsets = [0, 40], sizes = [8, 8], strides = [1, 1]} : vector<8x48xf32> to vector<8x8xf32>
    %c40 = arith.constant 40 : index
    %c0_52 = arith.constant 0 : index
    %149 = vector.load %arg2[%c40, %c0_52] : memref<256x64xf32, #tpu.memory_space<vmem>>, vector<8x64xf32>
    %cst_53 = arith.constant dense<0.000000e+00> : vector<8x64xf32>
    %150 = tpu.matmul %148, %149, %cst_53 {dimension_numbers = #tpu.dot_dimension_numbers<[1], [0], [0], [1], [0, 0, 1, 1], [], []>} : vector<8x8xf32>, vector<8x64xf32>, vector<8x64xf32> -> vector<8x64xf32>
    %151 = arith.addf %138, %150 : vector<8x64xf32>
    %c10 = arith.constant 10 : index
    %c0_54 = arith.constant 0 : index
    %c0_55 = arith.constant 0 : index
    %152 = vector.load %arg0[%c10, %c0_54, %c0_55] : memref<30x8x48xf32, #tpu.memory_space<vmem>>, vector<1x8x48xf32>
    %153 = vector.shape_cast %152 : vector<1x8x48xf32> to vector<8x48xf32>
    %154 = vector.shape_cast %7 : vector<1x48xi1> to vector<1x48xi1>
    %155 = vector.broadcast %154 : vector<1x48xi1> to vector<8x48xi1>
    %156 = arith.select %155, %153, %147 : vector<8x48xi1>, vector<8x48xf32>
    %cst_56 = arith.constant dense<0.000000e+00> : vector<8x48xf32>
    %157 = tpu.matmul %156, %0, %cst_56 {dimension_numbers = #tpu.dot_dimension_numbers<[1], [0], [0], [1], [0, 0, 1, 1], [], []>} : vector<8x48xf32>, vector<48x48xf32>, vector<8x48xf32> -> vector<8x48xf32>
    %158 = vector.broadcast %1 : vector<1x48xf32> to vector<8x48xf32>
    %159 = arith.addf %157, %158 : vector<8x48xf32>
    %160 = math.tanh %159 : vector<8x48xf32>
    %161 = vector.extract_strided_slice %160 {offsets = [0, 40], sizes = [8, 8], strides = [1, 1]} : vector<8x48xf32> to vector<8x8xf32>
    %c48_57 = arith.constant 48 : index
    %c0_58 = arith.constant 0 : index
    %162 = vector.load %arg2[%c48_57, %c0_58] : memref<256x64xf32, #tpu.memory_space<vmem>>, vector<8x64xf32>
    %cst_59 = arith.constant dense<0.000000e+00> : vector<8x64xf32>
    %163 = tpu.matmul %161, %162, %cst_59 {dimension_numbers = #tpu.dot_dimension_numbers<[1], [0], [0], [1], [0, 0, 1, 1], [], []>} : vector<8x8xf32>, vector<8x64xf32>, vector<8x64xf32> -> vector<8x64xf32>
    %164 = arith.addf %151, %163 : vector<8x64xf32>
    %c11 = arith.constant 11 : index
    %c0_60 = arith.constant 0 : index
    %c0_61 = arith.constant 0 : index
    %165 = vector.load %arg0[%c11, %c0_60, %c0_61] : memref<30x8x48xf32, #tpu.memory_space<vmem>>, vector<1x8x48xf32>
    %166 = vector.shape_cast %165 : vector<1x8x48xf32> to vector<8x48xf32>
    %167 = vector.shape_cast %7 : vector<1x48xi1> to vector<1x48xi1>
    %168 = vector.broadcast %167 : vector<1x48xi1> to vector<8x48xi1>
    %169 = arith.select %168, %166, %160 : vector<8x48xi1>, vector<8x48xf32>
    %cst_62 = arith.constant dense<0.000000e+00> : vector<8x48xf32>
    %170 = tpu.matmul %169, %0, %cst_62 {dimension_numbers = #tpu.dot_dimension_numbers<[1], [0], [0], [1], [0, 0, 1, 1], [], []>} : vector<8x48xf32>, vector<48x48xf32>, vector<8x48xf32> -> vector<8x48xf32>
    %171 = vector.broadcast %1 : vector<1x48xf32> to vector<8x48xf32>
    %172 = arith.addf %170, %171 : vector<8x48xf32>
    %173 = math.tanh %172 : vector<8x48xf32>
    %174 = vector.extract_strided_slice %173 {offsets = [0, 40], sizes = [8, 8], strides = [1, 1]} : vector<8x48xf32> to vector<8x8xf32>
    %c56 = arith.constant 56 : index
    %c0_63 = arith.constant 0 : index
    %175 = vector.load %arg2[%c56, %c0_63] : memref<256x64xf32, #tpu.memory_space<vmem>>, vector<8x64xf32>
    %cst_64 = arith.constant dense<0.000000e+00> : vector<8x64xf32>
    %176 = tpu.matmul %174, %175, %cst_64 {dimension_numbers = #tpu.dot_dimension_numbers<[1], [0], [0], [1], [0, 0, 1, 1], [], []>} : vector<8x8xf32>, vector<8x64xf32>, vector<8x64xf32> -> vector<8x64xf32>
    %177 = arith.addf %164, %176 : vector<8x64xf32>
    %c12 = arith.constant 12 : index
    %c0_65 = arith.constant 0 : index
    %c0_66 = arith.constant 0 : index
    %178 = vector.load %arg0[%c12, %c0_65, %c0_66] : memref<30x8x48xf32, #tpu.memory_space<vmem>>, vector<1x8x48xf32>
    %179 = vector.shape_cast %178 : vector<1x8x48xf32> to vector<8x48xf32>
    %180 = vector.shape_cast %7 : vector<1x48xi1> to vector<1x48xi1>
    %181 = vector.broadcast %180 : vector<1x48xi1> to vector<8x48xi1>
    %182 = arith.select %181, %179, %173 : vector<8x48xi1>, vector<8x48xf32>
    %cst_67 = arith.constant dense<0.000000e+00> : vector<8x48xf32>
    %183 = tpu.matmul %182, %0, %cst_67 {dimension_numbers = #tpu.dot_dimension_numbers<[1], [0], [0], [1], [0, 0, 1, 1], [], []>} : vector<8x48xf32>, vector<48x48xf32>, vector<8x48xf32> -> vector<8x48xf32>
    %184 = vector.broadcast %1 : vector<1x48xf32> to vector<8x48xf32>
    %185 = arith.addf %183, %184 : vector<8x48xf32>
    %186 = math.tanh %185 : vector<8x48xf32>
    %187 = vector.extract_strided_slice %186 {offsets = [0, 40], sizes = [8, 8], strides = [1, 1]} : vector<8x48xf32> to vector<8x8xf32>
    %c64 = arith.constant 64 : index
    %c0_68 = arith.constant 0 : index
    %188 = vector.load %arg2[%c64, %c0_68] : memref<256x64xf32, #tpu.memory_space<vmem>>, vector<8x64xf32>
    %cst_69 = arith.constant dense<0.000000e+00> : vector<8x64xf32>
    %189 = tpu.matmul %187, %188, %cst_69 {dimension_numbers = #tpu.dot_dimension_numbers<[1], [0], [0], [1], [0, 0, 1, 1], [], []>} : vector<8x8xf32>, vector<8x64xf32>, vector<8x64xf32> -> vector<8x64xf32>
    %190 = arith.addf %177, %189 : vector<8x64xf32>
    %c13 = arith.constant 13 : index
    %c0_70 = arith.constant 0 : index
    %c0_71 = arith.constant 0 : index
    %191 = vector.load %arg0[%c13, %c0_70, %c0_71] : memref<30x8x48xf32, #tpu.memory_space<vmem>>, vector<1x8x48xf32>
    %192 = vector.shape_cast %191 : vector<1x8x48xf32> to vector<8x48xf32>
    %193 = vector.shape_cast %7 : vector<1x48xi1> to vector<1x48xi1>
    %194 = vector.broadcast %193 : vector<1x48xi1> to vector<8x48xi1>
    %195 = arith.select %194, %192, %186 : vector<8x48xi1>, vector<8x48xf32>
    %cst_72 = arith.constant dense<0.000000e+00> : vector<8x48xf32>
    %196 = tpu.matmul %195, %0, %cst_72 {dimension_numbers = #tpu.dot_dimension_numbers<[1], [0], [0], [1], [0, 0, 1, 1], [], []>} : vector<8x48xf32>, vector<48x48xf32>, vector<8x48xf32> -> vector<8x48xf32>
    %197 = vector.broadcast %1 : vector<1x48xf32> to vector<8x48xf32>
    %198 = arith.addf %196, %197 : vector<8x48xf32>
    %199 = math.tanh %198 : vector<8x48xf32>
    %200 = vector.extract_strided_slice %199 {offsets = [0, 40], sizes = [8, 8], strides = [1, 1]} : vector<8x48xf32> to vector<8x8xf32>
    %c72 = arith.constant 72 : index
    %c0_73 = arith.constant 0 : index
    %201 = vector.load %arg2[%c72, %c0_73] : memref<256x64xf32, #tpu.memory_space<vmem>>, vector<8x64xf32>
    %cst_74 = arith.constant dense<0.000000e+00> : vector<8x64xf32>
    %202 = tpu.matmul %200, %201, %cst_74 {dimension_numbers = #tpu.dot_dimension_numbers<[1], [0], [0], [1], [0, 0, 1, 1], [], []>} : vector<8x8xf32>, vector<8x64xf32>, vector<8x64xf32> -> vector<8x64xf32>
    %203 = arith.addf %190, %202 : vector<8x64xf32>
    %c14 = arith.constant 14 : index
    %c0_75 = arith.constant 0 : index
    %c0_76 = arith.constant 0 : index
    %204 = vector.load %arg0[%c14, %c0_75, %c0_76] : memref<30x8x48xf32, #tpu.memory_space<vmem>>, vector<1x8x48xf32>
    %205 = vector.shape_cast %204 : vector<1x8x48xf32> to vector<8x48xf32>
    %206 = vector.shape_cast %7 : vector<1x48xi1> to vector<1x48xi1>
    %207 = vector.broadcast %206 : vector<1x48xi1> to vector<8x48xi1>
    %208 = arith.select %207, %205, %199 : vector<8x48xi1>, vector<8x48xf32>
    %cst_77 = arith.constant dense<0.000000e+00> : vector<8x48xf32>
    %209 = tpu.matmul %208, %0, %cst_77 {dimension_numbers = #tpu.dot_dimension_numbers<[1], [0], [0], [1], [0, 0, 1, 1], [], []>} : vector<8x48xf32>, vector<48x48xf32>, vector<8x48xf32> -> vector<8x48xf32>
    %210 = vector.broadcast %1 : vector<1x48xf32> to vector<8x48xf32>
    %211 = arith.addf %209, %210 : vector<8x48xf32>
    %212 = math.tanh %211 : vector<8x48xf32>
    %213 = vector.extract_strided_slice %212 {offsets = [0, 40], sizes = [8, 8], strides = [1, 1]} : vector<8x48xf32> to vector<8x8xf32>
    %c80 = arith.constant 80 : index
    %c0_78 = arith.constant 0 : index
    %214 = vector.load %arg2[%c80, %c0_78] : memref<256x64xf32, #tpu.memory_space<vmem>>, vector<8x64xf32>
    %cst_79 = arith.constant dense<0.000000e+00> : vector<8x64xf32>
    %215 = tpu.matmul %213, %214, %cst_79 {dimension_numbers = #tpu.dot_dimension_numbers<[1], [0], [0], [1], [0, 0, 1, 1], [], []>} : vector<8x8xf32>, vector<8x64xf32>, vector<8x64xf32> -> vector<8x64xf32>
    %216 = arith.addf %203, %215 : vector<8x64xf32>
    %c15 = arith.constant 15 : index
    %c0_80 = arith.constant 0 : index
    %c0_81 = arith.constant 0 : index
    %217 = vector.load %arg0[%c15, %c0_80, %c0_81] : memref<30x8x48xf32, #tpu.memory_space<vmem>>, vector<1x8x48xf32>
    %218 = vector.shape_cast %217 : vector<1x8x48xf32> to vector<8x48xf32>
    %219 = vector.shape_cast %7 : vector<1x48xi1> to vector<1x48xi1>
    %220 = vector.broadcast %219 : vector<1x48xi1> to vector<8x48xi1>
    %221 = arith.select %220, %218, %212 : vector<8x48xi1>, vector<8x48xf32>
    %cst_82 = arith.constant dense<0.000000e+00> : vector<8x48xf32>
    %222 = tpu.matmul %221, %0, %cst_82 {dimension_numbers = #tpu.dot_dimension_numbers<[1], [0], [0], [1], [0, 0, 1, 1], [], []>} : vector<8x48xf32>, vector<48x48xf32>, vector<8x48xf32> -> vector<8x48xf32>
    %223 = vector.broadcast %1 : vector<1x48xf32> to vector<8x48xf32>
    %224 = arith.addf %222, %223 : vector<8x48xf32>
    %225 = math.tanh %224 : vector<8x48xf32>
    %226 = vector.extract_strided_slice %225 {offsets = [0, 40], sizes = [8, 8], strides = [1, 1]} : vector<8x48xf32> to vector<8x8xf32>
    %c88 = arith.constant 88 : index
    %c0_83 = arith.constant 0 : index
    %227 = vector.load %arg2[%c88, %c0_83] : memref<256x64xf32, #tpu.memory_space<vmem>>, vector<8x64xf32>
    %cst_84 = arith.constant dense<0.000000e+00> : vector<8x64xf32>
    %228 = tpu.matmul %226, %227, %cst_84 {dimension_numbers = #tpu.dot_dimension_numbers<[1], [0], [0], [1], [0, 0, 1, 1], [], []>} : vector<8x8xf32>, vector<8x64xf32>, vector<8x64xf32> -> vector<8x64xf32>
    %229 = arith.addf %216, %228 : vector<8x64xf32>
    %c16_85 = arith.constant 16 : index
    %c0_86 = arith.constant 0 : index
    %c0_87 = arith.constant 0 : index
    %230 = vector.load %arg0[%c16_85, %c0_86, %c0_87] : memref<30x8x48xf32, #tpu.memory_space<vmem>>, vector<1x8x48xf32>
    %231 = vector.shape_cast %230 : vector<1x8x48xf32> to vector<8x48xf32>
    %232 = vector.shape_cast %7 : vector<1x48xi1> to vector<1x48xi1>
    %233 = vector.broadcast %232 : vector<1x48xi1> to vector<8x48xi1>
    %234 = arith.select %233, %231, %225 : vector<8x48xi1>, vector<8x48xf32>
    %cst_88 = arith.constant dense<0.000000e+00> : vector<8x48xf32>
    %235 = tpu.matmul %234, %0, %cst_88 {dimension_numbers = #tpu.dot_dimension_numbers<[1], [0], [0], [1], [0, 0, 1, 1], [], []>} : vector<8x48xf32>, vector<48x48xf32>, vector<8x48xf32> -> vector<8x48xf32>
    %236 = vector.broadcast %1 : vector<1x48xf32> to vector<8x48xf32>
    %237 = arith.addf %235, %236 : vector<8x48xf32>
    %238 = math.tanh %237 : vector<8x48xf32>
    %239 = vector.extract_strided_slice %238 {offsets = [0, 40], sizes = [8, 8], strides = [1, 1]} : vector<8x48xf32> to vector<8x8xf32>
    %c96 = arith.constant 96 : index
    %c0_89 = arith.constant 0 : index
    %240 = vector.load %arg2[%c96, %c0_89] : memref<256x64xf32, #tpu.memory_space<vmem>>, vector<8x64xf32>
    %cst_90 = arith.constant dense<0.000000e+00> : vector<8x64xf32>
    %241 = tpu.matmul %239, %240, %cst_90 {dimension_numbers = #tpu.dot_dimension_numbers<[1], [0], [0], [1], [0, 0, 1, 1], [], []>} : vector<8x8xf32>, vector<8x64xf32>, vector<8x64xf32> -> vector<8x64xf32>
    %242 = arith.addf %229, %241 : vector<8x64xf32>
    %c17 = arith.constant 17 : index
    %c0_91 = arith.constant 0 : index
    %c0_92 = arith.constant 0 : index
    %243 = vector.load %arg0[%c17, %c0_91, %c0_92] : memref<30x8x48xf32, #tpu.memory_space<vmem>>, vector<1x8x48xf32>
    %244 = vector.shape_cast %243 : vector<1x8x48xf32> to vector<8x48xf32>
    %245 = vector.shape_cast %7 : vector<1x48xi1> to vector<1x48xi1>
    %246 = vector.broadcast %245 : vector<1x48xi1> to vector<8x48xi1>
    %247 = arith.select %246, %244, %238 : vector<8x48xi1>, vector<8x48xf32>
    %cst_93 = arith.constant dense<0.000000e+00> : vector<8x48xf32>
    %248 = tpu.matmul %247, %0, %cst_93 {dimension_numbers = #tpu.dot_dimension_numbers<[1], [0], [0], [1], [0, 0, 1, 1], [], []>} : vector<8x48xf32>, vector<48x48xf32>, vector<8x48xf32> -> vector<8x48xf32>
    %249 = vector.broadcast %1 : vector<1x48xf32> to vector<8x48xf32>
    %250 = arith.addf %248, %249 : vector<8x48xf32>
    %251 = math.tanh %250 : vector<8x48xf32>
    %252 = vector.extract_strided_slice %251 {offsets = [0, 40], sizes = [8, 8], strides = [1, 1]} : vector<8x48xf32> to vector<8x8xf32>
    %c104 = arith.constant 104 : index
    %c0_94 = arith.constant 0 : index
    %253 = vector.load %arg2[%c104, %c0_94] : memref<256x64xf32, #tpu.memory_space<vmem>>, vector<8x64xf32>
    %cst_95 = arith.constant dense<0.000000e+00> : vector<8x64xf32>
    %254 = tpu.matmul %252, %253, %cst_95 {dimension_numbers = #tpu.dot_dimension_numbers<[1], [0], [0], [1], [0, 0, 1, 1], [], []>} : vector<8x8xf32>, vector<8x64xf32>, vector<8x64xf32> -> vector<8x64xf32>
    %255 = arith.addf %242, %254 : vector<8x64xf32>
    %c18 = arith.constant 18 : index
    %c0_96 = arith.constant 0 : index
    %c0_97 = arith.constant 0 : index
    %256 = vector.load %arg0[%c18, %c0_96, %c0_97] : memref<30x8x48xf32, #tpu.memory_space<vmem>>, vector<1x8x48xf32>
    %257 = vector.shape_cast %256 : vector<1x8x48xf32> to vector<8x48xf32>
    %258 = vector.shape_cast %7 : vector<1x48xi1> to vector<1x48xi1>
    %259 = vector.broadcast %258 : vector<1x48xi1> to vector<8x48xi1>
    %260 = arith.select %259, %257, %251 : vector<8x48xi1>, vector<8x48xf32>
    %cst_98 = arith.constant dense<0.000000e+00> : vector<8x48xf32>
    %261 = tpu.matmul %260, %0, %cst_98 {dimension_numbers = #tpu.dot_dimension_numbers<[1], [0], [0], [1], [0, 0, 1, 1], [], []>} : vector<8x48xf32>, vector<48x48xf32>, vector<8x48xf32> -> vector<8x48xf32>
    %262 = vector.broadcast %1 : vector<1x48xf32> to vector<8x48xf32>
    %263 = arith.addf %261, %262 : vector<8x48xf32>
    %264 = math.tanh %263 : vector<8x48xf32>
    %265 = vector.extract_strided_slice %264 {offsets = [0, 40], sizes = [8, 8], strides = [1, 1]} : vector<8x48xf32> to vector<8x8xf32>
    %c112 = arith.constant 112 : index
    %c0_99 = arith.constant 0 : index
    %266 = vector.load %arg2[%c112, %c0_99] : memref<256x64xf32, #tpu.memory_space<vmem>>, vector<8x64xf32>
    %cst_100 = arith.constant dense<0.000000e+00> : vector<8x64xf32>
    %267 = tpu.matmul %265, %266, %cst_100 {dimension_numbers = #tpu.dot_dimension_numbers<[1], [0], [0], [1], [0, 0, 1, 1], [], []>} : vector<8x8xf32>, vector<8x64xf32>, vector<8x64xf32> -> vector<8x64xf32>
    %268 = arith.addf %255, %267 : vector<8x64xf32>
    %c19 = arith.constant 19 : index
    %c0_101 = arith.constant 0 : index
    %c0_102 = arith.constant 0 : index
    %269 = vector.load %arg0[%c19, %c0_101, %c0_102] : memref<30x8x48xf32, #tpu.memory_space<vmem>>, vector<1x8x48xf32>
    %270 = vector.shape_cast %269 : vector<1x8x48xf32> to vector<8x48xf32>
    %271 = vector.shape_cast %7 : vector<1x48xi1> to vector<1x48xi1>
    %272 = vector.broadcast %271 : vector<1x48xi1> to vector<8x48xi1>
    %273 = arith.select %272, %270, %264 : vector<8x48xi1>, vector<8x48xf32>
    %cst_103 = arith.constant dense<0.000000e+00> : vector<8x48xf32>
    %274 = tpu.matmul %273, %0, %cst_103 {dimension_numbers = #tpu.dot_dimension_numbers<[1], [0], [0], [1], [0, 0, 1, 1], [], []>} : vector<8x48xf32>, vector<48x48xf32>, vector<8x48xf32> -> vector<8x48xf32>
    %275 = vector.broadcast %1 : vector<1x48xf32> to vector<8x48xf32>
    %276 = arith.addf %274, %275 : vector<8x48xf32>
    %277 = math.tanh %276 : vector<8x48xf32>
    %278 = vector.extract_strided_slice %277 {offsets = [0, 40], sizes = [8, 8], strides = [1, 1]} : vector<8x48xf32> to vector<8x8xf32>
    %c120 = arith.constant 120 : index
    %c0_104 = arith.constant 0 : index
    %279 = vector.load %arg2[%c120, %c0_104] : memref<256x64xf32, #tpu.memory_space<vmem>>, vector<8x64xf32>
    %cst_105 = arith.constant dense<0.000000e+00> : vector<8x64xf32>
    %280 = tpu.matmul %278, %279, %cst_105 {dimension_numbers = #tpu.dot_dimension_numbers<[1], [0], [0], [1], [0, 0, 1, 1], [], []>} : vector<8x8xf32>, vector<8x64xf32>, vector<8x64xf32> -> vector<8x64xf32>
    %281 = arith.addf %268, %280 : vector<8x64xf32>
    %c20 = arith.constant 20 : index
    %c0_106 = arith.constant 0 : index
    %c0_107 = arith.constant 0 : index
    %282 = vector.load %arg0[%c20, %c0_106, %c0_107] : memref<30x8x48xf32, #tpu.memory_space<vmem>>, vector<1x8x48xf32>
    %283 = vector.shape_cast %282 : vector<1x8x48xf32> to vector<8x48xf32>
    %284 = vector.shape_cast %7 : vector<1x48xi1> to vector<1x48xi1>
    %285 = vector.broadcast %284 : vector<1x48xi1> to vector<8x48xi1>
    %286 = arith.select %285, %283, %277 : vector<8x48xi1>, vector<8x48xf32>
    %cst_108 = arith.constant dense<0.000000e+00> : vector<8x48xf32>
    %287 = tpu.matmul %286, %0, %cst_108 {dimension_numbers = #tpu.dot_dimension_numbers<[1], [0], [0], [1], [0, 0, 1, 1], [], []>} : vector<8x48xf32>, vector<48x48xf32>, vector<8x48xf32> -> vector<8x48xf32>
    %288 = vector.broadcast %1 : vector<1x48xf32> to vector<8x48xf32>
    %289 = arith.addf %287, %288 : vector<8x48xf32>
    %290 = math.tanh %289 : vector<8x48xf32>
    %291 = vector.extract_strided_slice %290 {offsets = [0, 40], sizes = [8, 8], strides = [1, 1]} : vector<8x48xf32> to vector<8x8xf32>
    %c128 = arith.constant 128 : index
    %c0_109 = arith.constant 0 : index
    %292 = vector.load %arg2[%c128, %c0_109] : memref<256x64xf32, #tpu.memory_space<vmem>>, vector<8x64xf32>
    %cst_110 = arith.constant dense<0.000000e+00> : vector<8x64xf32>
    %293 = tpu.matmul %291, %292, %cst_110 {dimension_numbers = #tpu.dot_dimension_numbers<[1], [0], [0], [1], [0, 0, 1, 1], [], []>} : vector<8x8xf32>, vector<8x64xf32>, vector<8x64xf32> -> vector<8x64xf32>
    %294 = arith.addf %281, %293 : vector<8x64xf32>
    %c21 = arith.constant 21 : index
    %c0_111 = arith.constant 0 : index
    %c0_112 = arith.constant 0 : index
    %295 = vector.load %arg0[%c21, %c0_111, %c0_112] : memref<30x8x48xf32, #tpu.memory_space<vmem>>, vector<1x8x48xf32>
    %296 = vector.shape_cast %295 : vector<1x8x48xf32> to vector<8x48xf32>
    %297 = vector.shape_cast %7 : vector<1x48xi1> to vector<1x48xi1>
    %298 = vector.broadcast %297 : vector<1x48xi1> to vector<8x48xi1>
    %299 = arith.select %298, %296, %290 : vector<8x48xi1>, vector<8x48xf32>
    %cst_113 = arith.constant dense<0.000000e+00> : vector<8x48xf32>
    %300 = tpu.matmul %299, %0, %cst_113 {dimension_numbers = #tpu.dot_dimension_numbers<[1], [0], [0], [1], [0, 0, 1, 1], [], []>} : vector<8x48xf32>, vector<48x48xf32>, vector<8x48xf32> -> vector<8x48xf32>
    %301 = vector.broadcast %1 : vector<1x48xf32> to vector<8x48xf32>
    %302 = arith.addf %300, %301 : vector<8x48xf32>
    %303 = math.tanh %302 : vector<8x48xf32>
    %304 = vector.extract_strided_slice %303 {offsets = [0, 40], sizes = [8, 8], strides = [1, 1]} : vector<8x48xf32> to vector<8x8xf32>
    %c136 = arith.constant 136 : index
    %c0_114 = arith.constant 0 : index
    %305 = vector.load %arg2[%c136, %c0_114] : memref<256x64xf32, #tpu.memory_space<vmem>>, vector<8x64xf32>
    %cst_115 = arith.constant dense<0.000000e+00> : vector<8x64xf32>
    %306 = tpu.matmul %304, %305, %cst_115 {dimension_numbers = #tpu.dot_dimension_numbers<[1], [0], [0], [1], [0, 0, 1, 1], [], []>} : vector<8x8xf32>, vector<8x64xf32>, vector<8x64xf32> -> vector<8x64xf32>
    %307 = arith.addf %294, %306 : vector<8x64xf32>
    %c22 = arith.constant 22 : index
    %c0_116 = arith.constant 0 : index
    %c0_117 = arith.constant 0 : index
    %308 = vector.load %arg0[%c22, %c0_116, %c0_117] : memref<30x8x48xf32, #tpu.memory_space<vmem>>, vector<1x8x48xf32>
    %309 = vector.shape_cast %308 : vector<1x8x48xf32> to vector<8x48xf32>
    %310 = vector.shape_cast %7 : vector<1x48xi1> to vector<1x48xi1>
    %311 = vector.broadcast %310 : vector<1x48xi1> to vector<8x48xi1>
    %312 = arith.select %311, %309, %303 : vector<8x48xi1>, vector<8x48xf32>
    %cst_118 = arith.constant dense<0.000000e+00> : vector<8x48xf32>
    %313 = tpu.matmul %312, %0, %cst_118 {dimension_numbers = #tpu.dot_dimension_numbers<[1], [0], [0], [1], [0, 0, 1, 1], [], []>} : vector<8x48xf32>, vector<48x48xf32>, vector<8x48xf32> -> vector<8x48xf32>
    %314 = vector.broadcast %1 : vector<1x48xf32> to vector<8x48xf32>
    %315 = arith.addf %313, %314 : vector<8x48xf32>
    %316 = math.tanh %315 : vector<8x48xf32>
    %317 = vector.extract_strided_slice %316 {offsets = [0, 40], sizes = [8, 8], strides = [1, 1]} : vector<8x48xf32> to vector<8x8xf32>
    %c144 = arith.constant 144 : index
    %c0_119 = arith.constant 0 : index
    %318 = vector.load %arg2[%c144, %c0_119] : memref<256x64xf32, #tpu.memory_space<vmem>>, vector<8x64xf32>
    %cst_120 = arith.constant dense<0.000000e+00> : vector<8x64xf32>
    %319 = tpu.matmul %317, %318, %cst_120 {dimension_numbers = #tpu.dot_dimension_numbers<[1], [0], [0], [1], [0, 0, 1, 1], [], []>} : vector<8x8xf32>, vector<8x64xf32>, vector<8x64xf32> -> vector<8x64xf32>
    %320 = arith.addf %307, %319 : vector<8x64xf32>
    %c23 = arith.constant 23 : index
    %c0_121 = arith.constant 0 : index
    %c0_122 = arith.constant 0 : index
    %321 = vector.load %arg0[%c23, %c0_121, %c0_122] : memref<30x8x48xf32, #tpu.memory_space<vmem>>, vector<1x8x48xf32>
    %322 = vector.shape_cast %321 : vector<1x8x48xf32> to vector<8x48xf32>
    %323 = vector.shape_cast %7 : vector<1x48xi1> to vector<1x48xi1>
    %324 = vector.broadcast %323 : vector<1x48xi1> to vector<8x48xi1>
    %325 = arith.select %324, %322, %316 : vector<8x48xi1>, vector<8x48xf32>
    %cst_123 = arith.constant dense<0.000000e+00> : vector<8x48xf32>
    %326 = tpu.matmul %325, %0, %cst_123 {dimension_numbers = #tpu.dot_dimension_numbers<[1], [0], [0], [1], [0, 0, 1, 1], [], []>} : vector<8x48xf32>, vector<48x48xf32>, vector<8x48xf32> -> vector<8x48xf32>
    %327 = vector.broadcast %1 : vector<1x48xf32> to vector<8x48xf32>
    %328 = arith.addf %326, %327 : vector<8x48xf32>
    %329 = math.tanh %328 : vector<8x48xf32>
    %330 = vector.extract_strided_slice %329 {offsets = [0, 40], sizes = [8, 8], strides = [1, 1]} : vector<8x48xf32> to vector<8x8xf32>
    %c152 = arith.constant 152 : index
    %c0_124 = arith.constant 0 : index
    %331 = vector.load %arg2[%c152, %c0_124] : memref<256x64xf32, #tpu.memory_space<vmem>>, vector<8x64xf32>
    %cst_125 = arith.constant dense<0.000000e+00> : vector<8x64xf32>
    %332 = tpu.matmul %330, %331, %cst_125 {dimension_numbers = #tpu.dot_dimension_numbers<[1], [0], [0], [1], [0, 0, 1, 1], [], []>} : vector<8x8xf32>, vector<8x64xf32>, vector<8x64xf32> -> vector<8x64xf32>
    %333 = arith.addf %320, %332 : vector<8x64xf32>
    %c24_126 = arith.constant 24 : index
    %c0_127 = arith.constant 0 : index
    %c0_128 = arith.constant 0 : index
    %334 = vector.load %arg0[%c24_126, %c0_127, %c0_128] : memref<30x8x48xf32, #tpu.memory_space<vmem>>, vector<1x8x48xf32>
    %335 = vector.shape_cast %334 : vector<1x8x48xf32> to vector<8x48xf32>
    %336 = vector.shape_cast %7 : vector<1x48xi1> to vector<1x48xi1>
    %337 = vector.broadcast %336 : vector<1x48xi1> to vector<8x48xi1>
    %338 = arith.select %337, %335, %329 : vector<8x48xi1>, vector<8x48xf32>
    %cst_129 = arith.constant dense<0.000000e+00> : vector<8x48xf32>
    %339 = tpu.matmul %338, %0, %cst_129 {dimension_numbers = #tpu.dot_dimension_numbers<[1], [0], [0], [1], [0, 0, 1, 1], [], []>} : vector<8x48xf32>, vector<48x48xf32>, vector<8x48xf32> -> vector<8x48xf32>
    %340 = vector.broadcast %1 : vector<1x48xf32> to vector<8x48xf32>
    %341 = arith.addf %339, %340 : vector<8x48xf32>
    %342 = math.tanh %341 : vector<8x48xf32>
    %343 = vector.extract_strided_slice %342 {offsets = [0, 40], sizes = [8, 8], strides = [1, 1]} : vector<8x48xf32> to vector<8x8xf32>
    %c160 = arith.constant 160 : index
    %c0_130 = arith.constant 0 : index
    %344 = vector.load %arg2[%c160, %c0_130] : memref<256x64xf32, #tpu.memory_space<vmem>>, vector<8x64xf32>
    %cst_131 = arith.constant dense<0.000000e+00> : vector<8x64xf32>
    %345 = tpu.matmul %343, %344, %cst_131 {dimension_numbers = #tpu.dot_dimension_numbers<[1], [0], [0], [1], [0, 0, 1, 1], [], []>} : vector<8x8xf32>, vector<8x64xf32>, vector<8x64xf32> -> vector<8x64xf32>
    %346 = arith.addf %333, %345 : vector<8x64xf32>
    %c25 = arith.constant 25 : index
    %c0_132 = arith.constant 0 : index
    %c0_133 = arith.constant 0 : index
    %347 = vector.load %arg0[%c25, %c0_132, %c0_133] : memref<30x8x48xf32, #tpu.memory_space<vmem>>, vector<1x8x48xf32>
    %348 = vector.shape_cast %347 : vector<1x8x48xf32> to vector<8x48xf32>
    %349 = vector.shape_cast %7 : vector<1x48xi1> to vector<1x48xi1>
    %350 = vector.broadcast %349 : vector<1x48xi1> to vector<8x48xi1>
    %351 = arith.select %350, %348, %342 : vector<8x48xi1>, vector<8x48xf32>
    %cst_134 = arith.constant dense<0.000000e+00> : vector<8x48xf32>
    %352 = tpu.matmul %351, %0, %cst_134 {dimension_numbers = #tpu.dot_dimension_numbers<[1], [0], [0], [1], [0, 0, 1, 1], [], []>} : vector<8x48xf32>, vector<48x48xf32>, vector<8x48xf32> -> vector<8x48xf32>
    %353 = vector.broadcast %1 : vector<1x48xf32> to vector<8x48xf32>
    %354 = arith.addf %352, %353 : vector<8x48xf32>
    %355 = math.tanh %354 : vector<8x48xf32>
    %356 = vector.extract_strided_slice %355 {offsets = [0, 40], sizes = [8, 8], strides = [1, 1]} : vector<8x48xf32> to vector<8x8xf32>
    %c168 = arith.constant 168 : index
    %c0_135 = arith.constant 0 : index
    %357 = vector.load %arg2[%c168, %c0_135] : memref<256x64xf32, #tpu.memory_space<vmem>>, vector<8x64xf32>
    %cst_136 = arith.constant dense<0.000000e+00> : vector<8x64xf32>
    %358 = tpu.matmul %356, %357, %cst_136 {dimension_numbers = #tpu.dot_dimension_numbers<[1], [0], [0], [1], [0, 0, 1, 1], [], []>} : vector<8x8xf32>, vector<8x64xf32>, vector<8x64xf32> -> vector<8x64xf32>
    %359 = arith.addf %346, %358 : vector<8x64xf32>
    %c26 = arith.constant 26 : index
    %c0_137 = arith.constant 0 : index
    %c0_138 = arith.constant 0 : index
    %360 = vector.load %arg0[%c26, %c0_137, %c0_138] : memref<30x8x48xf32, #tpu.memory_space<vmem>>, vector<1x8x48xf32>
    %361 = vector.shape_cast %360 : vector<1x8x48xf32> to vector<8x48xf32>
    %362 = vector.shape_cast %7 : vector<1x48xi1> to vector<1x48xi1>
    %363 = vector.broadcast %362 : vector<1x48xi1> to vector<8x48xi1>
    %364 = arith.select %363, %361, %355 : vector<8x48xi1>, vector<8x48xf32>
    %cst_139 = arith.constant dense<0.000000e+00> : vector<8x48xf32>
    %365 = tpu.matmul %364, %0, %cst_139 {dimension_numbers = #tpu.dot_dimension_numbers<[1], [0], [0], [1], [0, 0, 1, 1], [], []>} : vector<8x48xf32>, vector<48x48xf32>, vector<8x48xf32> -> vector<8x48xf32>
    %366 = vector.broadcast %1 : vector<1x48xf32> to vector<8x48xf32>
    %367 = arith.addf %365, %366 : vector<8x48xf32>
    %368 = math.tanh %367 : vector<8x48xf32>
    %369 = vector.extract_strided_slice %368 {offsets = [0, 40], sizes = [8, 8], strides = [1, 1]} : vector<8x48xf32> to vector<8x8xf32>
    %c176 = arith.constant 176 : index
    %c0_140 = arith.constant 0 : index
    %370 = vector.load %arg2[%c176, %c0_140] : memref<256x64xf32, #tpu.memory_space<vmem>>, vector<8x64xf32>
    %cst_141 = arith.constant dense<0.000000e+00> : vector<8x64xf32>
    %371 = tpu.matmul %369, %370, %cst_141 {dimension_numbers = #tpu.dot_dimension_numbers<[1], [0], [0], [1], [0, 0, 1, 1], [], []>} : vector<8x8xf32>, vector<8x64xf32>, vector<8x64xf32> -> vector<8x64xf32>
    %372 = arith.addf %359, %371 : vector<8x64xf32>
    %c27 = arith.constant 27 : index
    %c0_142 = arith.constant 0 : index
    %c0_143 = arith.constant 0 : index
    %373 = vector.load %arg0[%c27, %c0_142, %c0_143] : memref<30x8x48xf32, #tpu.memory_space<vmem>>, vector<1x8x48xf32>
    %374 = vector.shape_cast %373 : vector<1x8x48xf32> to vector<8x48xf32>
    %375 = vector.shape_cast %7 : vector<1x48xi1> to vector<1x48xi1>
    %376 = vector.broadcast %375 : vector<1x48xi1> to vector<8x48xi1>
    %377 = arith.select %376, %374, %368 : vector<8x48xi1>, vector<8x48xf32>
    %cst_144 = arith.constant dense<0.000000e+00> : vector<8x48xf32>
    %378 = tpu.matmul %377, %0, %cst_144 {dimension_numbers = #tpu.dot_dimension_numbers<[1], [0], [0], [1], [0, 0, 1, 1], [], []>} : vector<8x48xf32>, vector<48x48xf32>, vector<8x48xf32> -> vector<8x48xf32>
    %379 = vector.broadcast %1 : vector<1x48xf32> to vector<8x48xf32>
    %380 = arith.addf %378, %379 : vector<8x48xf32>
    %381 = math.tanh %380 : vector<8x48xf32>
    %382 = vector.extract_strided_slice %381 {offsets = [0, 40], sizes = [8, 8], strides = [1, 1]} : vector<8x48xf32> to vector<8x8xf32>
    %c184 = arith.constant 184 : index
    %c0_145 = arith.constant 0 : index
    %383 = vector.load %arg2[%c184, %c0_145] : memref<256x64xf32, #tpu.memory_space<vmem>>, vector<8x64xf32>
    %cst_146 = arith.constant dense<0.000000e+00> : vector<8x64xf32>
    %384 = tpu.matmul %382, %383, %cst_146 {dimension_numbers = #tpu.dot_dimension_numbers<[1], [0], [0], [1], [0, 0, 1, 1], [], []>} : vector<8x8xf32>, vector<8x64xf32>, vector<8x64xf32> -> vector<8x64xf32>
    %385 = arith.addf %372, %384 : vector<8x64xf32>
    %c28 = arith.constant 28 : index
    %c0_147 = arith.constant 0 : index
    %c0_148 = arith.constant 0 : index
    %386 = vector.load %arg0[%c28, %c0_147, %c0_148] : memref<30x8x48xf32, #tpu.memory_space<vmem>>, vector<1x8x48xf32>
    %387 = vector.shape_cast %386 : vector<1x8x48xf32> to vector<8x48xf32>
    %388 = vector.shape_cast %7 : vector<1x48xi1> to vector<1x48xi1>
    %389 = vector.broadcast %388 : vector<1x48xi1> to vector<8x48xi1>
    %390 = arith.select %389, %387, %381 : vector<8x48xi1>, vector<8x48xf32>
    %cst_149 = arith.constant dense<0.000000e+00> : vector<8x48xf32>
    %391 = tpu.matmul %390, %0, %cst_149 {dimension_numbers = #tpu.dot_dimension_numbers<[1], [0], [0], [1], [0, 0, 1, 1], [], []>} : vector<8x48xf32>, vector<48x48xf32>, vector<8x48xf32> -> vector<8x48xf32>
    %392 = vector.broadcast %1 : vector<1x48xf32> to vector<8x48xf32>
    %393 = arith.addf %391, %392 : vector<8x48xf32>
    %394 = math.tanh %393 : vector<8x48xf32>
    %395 = vector.extract_strided_slice %394 {offsets = [0, 40], sizes = [8, 8], strides = [1, 1]} : vector<8x48xf32> to vector<8x8xf32>
    %c192 = arith.constant 192 : index
    %c0_150 = arith.constant 0 : index
    %396 = vector.load %arg2[%c192, %c0_150] : memref<256x64xf32, #tpu.memory_space<vmem>>, vector<8x64xf32>
    %cst_151 = arith.constant dense<0.000000e+00> : vector<8x64xf32>
    %397 = tpu.matmul %395, %396, %cst_151 {dimension_numbers = #tpu.dot_dimension_numbers<[1], [0], [0], [1], [0, 0, 1, 1], [], []>} : vector<8x8xf32>, vector<8x64xf32>, vector<8x64xf32> -> vector<8x64xf32>
    %398 = arith.addf %385, %397 : vector<8x64xf32>
    %c29 = arith.constant 29 : index
    %c0_152 = arith.constant 0 : index
    %c0_153 = arith.constant 0 : index
    %399 = vector.load %arg0[%c29, %c0_152, %c0_153] : memref<30x8x48xf32, #tpu.memory_space<vmem>>, vector<1x8x48xf32>
    %400 = vector.shape_cast %399 : vector<1x8x48xf32> to vector<8x48xf32>
    %401 = vector.shape_cast %7 : vector<1x48xi1> to vector<1x48xi1>
    %402 = vector.broadcast %401 : vector<1x48xi1> to vector<8x48xi1>
    %403 = arith.select %402, %400, %394 : vector<8x48xi1>, vector<8x48xf32>
    %cst_154 = arith.constant dense<0.000000e+00> : vector<8x48xf32>
    %404 = tpu.matmul %403, %0, %cst_154 {dimension_numbers = #tpu.dot_dimension_numbers<[1], [0], [0], [1], [0, 0, 1, 1], [], []>} : vector<8x48xf32>, vector<48x48xf32>, vector<8x48xf32> -> vector<8x48xf32>
    %405 = vector.broadcast %1 : vector<1x48xf32> to vector<8x48xf32>
    %406 = arith.addf %404, %405 : vector<8x48xf32>
    %407 = math.tanh %406 : vector<8x48xf32>
    %408 = vector.extract_strided_slice %407 {offsets = [0, 40], sizes = [8, 8], strides = [1, 1]} : vector<8x48xf32> to vector<8x8xf32>
    %c200 = arith.constant 200 : index
    %c0_155 = arith.constant 0 : index
    %409 = vector.load %arg2[%c200, %c0_155] : memref<256x64xf32, #tpu.memory_space<vmem>>, vector<8x64xf32>
    %cst_156 = arith.constant dense<0.000000e+00> : vector<8x64xf32>
    %410 = tpu.matmul %408, %409, %cst_156 {dimension_numbers = #tpu.dot_dimension_numbers<[1], [0], [0], [1], [0, 0, 1, 1], [], []>} : vector<8x8xf32>, vector<8x64xf32>, vector<8x64xf32> -> vector<8x64xf32>
    %411 = arith.addf %398, %410 : vector<8x64xf32>
    %cst_157 = arith.constant dense<0.000000e+00> : vector<8x48xf32>
    %412 = tpu.matmul %407, %0, %cst_157 {dimension_numbers = #tpu.dot_dimension_numbers<[1], [0], [0], [1], [0, 0, 1, 1], [], []>} : vector<8x48xf32>, vector<48x48xf32>, vector<8x48xf32> -> vector<8x48xf32>
    %413 = vector.broadcast %1 : vector<1x48xf32> to vector<8x48xf32>
    %414 = arith.addf %412, %413 : vector<8x48xf32>
    %415 = math.tanh %414 : vector<8x48xf32>
    %416 = vector.extract_strided_slice %415 {offsets = [0, 40], sizes = [8, 8], strides = [1, 1]} : vector<8x48xf32> to vector<8x8xf32>
    %c208 = arith.constant 208 : index
    %c0_158 = arith.constant 0 : index
    %417 = vector.load %arg2[%c208, %c0_158] : memref<256x64xf32, #tpu.memory_space<vmem>>, vector<8x64xf32>
    %cst_159 = arith.constant dense<0.000000e+00> : vector<8x64xf32>
    %418 = tpu.matmul %416, %417, %cst_159 {dimension_numbers = #tpu.dot_dimension_numbers<[1], [0], [0], [1], [0, 0, 1, 1], [], []>} : vector<8x8xf32>, vector<8x64xf32>, vector<8x64xf32> -> vector<8x64xf32>
    %419 = arith.addf %411, %418 : vector<8x64xf32>
    %c16_i32_160 = arith.constant 16 : i32
    %420 = vector.broadcast %c16_i32_160 : i32 to vector<1x48xi32>
    %421 = arith.cmpi sge, %5, %420 : vector<1x48xi32>
    %c48_i32 = arith.constant 48 : i32
    %422 = vector.broadcast %c48_i32 : i32 to vector<1x48xi32>
    %423 = arith.cmpi slt, %5, %422 : vector<1x48xi32>
    %424 = arith.andi %421, %423 : vector<1x48xi1>
    %425 = vector.shape_cast %424 : vector<1x48xi1> to vector<1x48xi1>
    %426 = vector.broadcast %425 : vector<1x48xi1> to vector<8x48xi1>
    %427 = arith.select %426, %415, %407 : vector<8x48xi1>, vector<8x48xf32>
    %cst_161 = arith.constant dense<0.000000e+00> : vector<8x48xf32>
    %428 = tpu.matmul %427, %0, %cst_161 {dimension_numbers = #tpu.dot_dimension_numbers<[1], [0], [0], [1], [0, 0, 1, 1], [], []>} : vector<8x48xf32>, vector<48x48xf32>, vector<8x48xf32> -> vector<8x48xf32>
    %429 = vector.broadcast %1 : vector<1x48xf32> to vector<8x48xf32>
    %430 = arith.addf %428, %429 : vector<8x48xf32>
    %431 = math.tanh %430 : vector<8x48xf32>
    %432 = vector.extract_strided_slice %431 {offsets = [0, 40], sizes = [8, 8], strides = [1, 1]} : vector<8x48xf32> to vector<8x8xf32>
    %c216 = arith.constant 216 : index
    %c0_162 = arith.constant 0 : index
    %433 = vector.load %arg2[%c216, %c0_162] : memref<256x64xf32, #tpu.memory_space<vmem>>, vector<8x64xf32>
    %cst_163 = arith.constant dense<0.000000e+00> : vector<8x64xf32>
    %434 = tpu.matmul %432, %433, %cst_163 {dimension_numbers = #tpu.dot_dimension_numbers<[1], [0], [0], [1], [0, 0, 1, 1], [], []>} : vector<8x8xf32>, vector<8x64xf32>, vector<8x64xf32> -> vector<8x64xf32>
    %435 = arith.addf %419, %434 : vector<8x64xf32>
    %c24_i32_164 = arith.constant 24 : i32
    %436 = vector.broadcast %c24_i32_164 : i32 to vector<1x48xi32>
    %437 = arith.cmpi sge, %5, %436 : vector<1x48xi32>
    %c48_i32_165 = arith.constant 48 : i32
    %438 = vector.broadcast %c48_i32_165 : i32 to vector<1x48xi32>
    %439 = arith.cmpi slt, %5, %438 : vector<1x48xi32>
    %440 = arith.andi %437, %439 : vector<1x48xi1>
    %441 = vector.shape_cast %440 : vector<1x48xi1> to vector<1x48xi1>
    %442 = vector.broadcast %441 : vector<1x48xi1> to vector<8x48xi1>
    %443 = arith.select %442, %431, %427 : vector<8x48xi1>, vector<8x48xf32>
    %cst_166 = arith.constant dense<0.000000e+00> : vector<8x48xf32>
    %444 = tpu.matmul %443, %0, %cst_166 {dimension_numbers = #tpu.dot_dimension_numbers<[1], [0], [0], [1], [0, 0, 1, 1], [], []>} : vector<8x48xf32>, vector<48x48xf32>, vector<8x48xf32> -> vector<8x48xf32>
    %445 = vector.broadcast %1 : vector<1x48xf32> to vector<8x48xf32>
    %446 = arith.addf %444, %445 : vector<8x48xf32>
    %447 = math.tanh %446 : vector<8x48xf32>
    %448 = vector.extract_strided_slice %447 {offsets = [0, 40], sizes = [8, 8], strides = [1, 1]} : vector<8x48xf32> to vector<8x8xf32>
    %c224 = arith.constant 224 : index
    %c0_167 = arith.constant 0 : index
    %449 = vector.load %arg2[%c224, %c0_167] : memref<256x64xf32, #tpu.memory_space<vmem>>, vector<8x64xf32>
    %cst_168 = arith.constant dense<0.000000e+00> : vector<8x64xf32>
    %450 = tpu.matmul %448, %449, %cst_168 {dimension_numbers = #tpu.dot_dimension_numbers<[1], [0], [0], [1], [0, 0, 1, 1], [], []>} : vector<8x8xf32>, vector<8x64xf32>, vector<8x64xf32> -> vector<8x64xf32>
    %451 = arith.addf %435, %450 : vector<8x64xf32>
    %c32_i32_169 = arith.constant 32 : i32
    %452 = vector.broadcast %c32_i32_169 : i32 to vector<1x48xi32>
    %453 = arith.cmpi sge, %5, %452 : vector<1x48xi32>
    %c48_i32_170 = arith.constant 48 : i32
    %454 = vector.broadcast %c48_i32_170 : i32 to vector<1x48xi32>
    %455 = arith.cmpi slt, %5, %454 : vector<1x48xi32>
    %456 = arith.andi %453, %455 : vector<1x48xi1>
    %457 = vector.shape_cast %456 : vector<1x48xi1> to vector<1x48xi1>
    %458 = vector.broadcast %457 : vector<1x48xi1> to vector<8x48xi1>
    %459 = arith.select %458, %447, %443 : vector<8x48xi1>, vector<8x48xf32>
    %cst_171 = arith.constant dense<0.000000e+00> : vector<8x48xf32>
    %460 = tpu.matmul %459, %0, %cst_171 {dimension_numbers = #tpu.dot_dimension_numbers<[1], [0], [0], [1], [0, 0, 1, 1], [], []>} : vector<8x48xf32>, vector<48x48xf32>, vector<8x48xf32> -> vector<8x48xf32>
    %461 = vector.broadcast %1 : vector<1x48xf32> to vector<8x48xf32>
    %462 = arith.addf %460, %461 : vector<8x48xf32>
    %463 = math.tanh %462 : vector<8x48xf32>
    %464 = vector.extract_strided_slice %463 {offsets = [0, 40], sizes = [8, 8], strides = [1, 1]} : vector<8x48xf32> to vector<8x8xf32>
    %c232 = arith.constant 232 : index
    %c0_172 = arith.constant 0 : index
    %465 = vector.load %arg2[%c232, %c0_172] : memref<256x64xf32, #tpu.memory_space<vmem>>, vector<8x64xf32>
    %cst_173 = arith.constant dense<0.000000e+00> : vector<8x64xf32>
    %466 = tpu.matmul %464, %465, %cst_173 {dimension_numbers = #tpu.dot_dimension_numbers<[1], [0], [0], [1], [0, 0, 1, 1], [], []>} : vector<8x8xf32>, vector<8x64xf32>, vector<8x64xf32> -> vector<8x64xf32>
    %467 = arith.addf %451, %466 : vector<8x64xf32>
    %468 = vector.broadcast %2 : vector<1x64xf32> to vector<8x64xf32>
    %469 = arith.addf %467, %468 : vector<8x64xf32>
    %470 = math.tanh %469 : vector<8x64xf32>
    %471 = vector.broadcast %3 : vector<1x64xf32> to vector<8x64xf32>
    %472 = arith.mulf %470, %471 : vector<8x64xf32>
    %cst_174 = arith.constant dense<0.000000e+00> : vector<8xf32>
    %473 = vector.multi_reduction <add>, %472, %cst_174 [1] : vector<8x64xf32> to vector<8xf32>
    %474 = vector.shape_cast %473 : vector<8xf32> to vector<8x1xf32>
    %475 = vector.broadcast %4 : f32 to vector<8x1xf32>
    %476 = arith.addf %474, %475 : vector<8x1xf32>
    %c0_175 = arith.constant 0 : index
    %c0_176 = arith.constant 0 : index
    %477 = vector.load %arg4[%c0_175, %c0_176] : memref<8x1xf32, #tpu.memory_space<vmem>>, vector<8x1xf32>
    tpu.vector_store %arg4[%c0_175, %c0_176], %476 {strides = array<i32>} : memref<8x1xf32, #tpu.memory_space<vmem>>, vector<8x1xf32>,
    return
  }
}

</mosaic_0001>

<bundles_post_ra>
// kernel: tpu_custom_call.1
= control target key start
LH: loop header
LB: loop body
LE: loop exit
PB: predicated region body
PF: predicated region fallthrough
CT: control target
= control target key end

     0   :  { %v6445_v0 = vmov 0.0|0.0   ;;  %vm6446_vm0 = vmmov 0   ;;  %v6447_v4 = vmov 0.0   ;;  %vm36_vm1 = vcmask 392192   ;;  %s6448_s19 = smov 88   ;;  %s7274_s1 = inlined_call_operand.vmem [shape: f32[56,48], index: 1, kind: input, shape index: {}]   ;;  %s7275_s0 = inlined_call_operand.vmem [shape: f32[30,8,48], index: 0, kind: input, shape index: {}]   ;;  %s7276_s2 = inlined_call_operand.vmem [shape: f32[256,64], index: 2, kind: input, shape index: {}]   ;;  %s7277_s3 = inlined_call_operand.<no memory space> [shape: f32[1], index: 3, kind: input, shape index: {}]   ;;  %s7278_s4 = inlined_call_operand.vmem [shape: f32[8,1], index: 4, kind: output, shape index: {}]  }
   0x1   :  { %6064 = vmatprep.subr.bf16.mxu0 %v6445_v0  ;;  %v18_v1 = vld [vmem:[%s7274_s1] sm:$0xff]  ;;  %v19_v2 = vld [vmem:[%s7274_s1 + $0x8] sm:$0xff]  ;;  %v20_v3 = vld [vmem:[%s7274_s1 + $0x10] sm:$0xff]  ;;  %5416 = vmatprep.mubr.msk.f32.mxu0 %vm6446_vm0, %v6447_v4  ;;  %v28_v14 = vlaneseq  ;;  %vm524_vm12 = vcmask 64512  }
   0x2   :  { %v6486_v5 = vpack.c.bf16 %v19_v2, %v18_v1  ;;  %v21_v6 = vld [vmem:[%s7274_s1 + $0x18] sm:$0xff]  ;;  %6073 = vmatprep.subr.bf16.mxu1 %v6445_v0  ;;  %5431 = vmatprep.mubr.msk.f32.mxu1 %vm6446_vm0, %v6447_v4  ;;  %v22_v8 = vld [vmem:[%s7274_s1 + $0x20] sm:$0xff]  ;;  %v23_v9 = vld [vmem:[%s7274_s1 + $0x28] sm:$0xff] }
   0x3   :  { %v6495_v7 = vpack.c.bf16 %v21_v6, %v20_v3  ;;  %v6507_v10 = vpack.c.bf16 %v23_v9, %v22_v8  ;;  %v31_v11 = vld [vmem:[%s7275_s0] sm:$0xff]  ;;  %v6531_v12 = vld [vmem:[%s7274_s1 + $0x30] ss:$0 sm:$0xff]  ;;  %v6534_v17 = vand.u32 127, %v28_v14  ;;  %v5012_v18 = vld [vmem:[%s7275_s0 + $0x8] sm:$0xff] }
   0x4   :  { %6066 = vmatpush3.bf16.msra.mxu0 %v6486_v5  ;;  %6075 = vmatpush3.bf16.msra.mxu1 %v6486_v5  ;;  %v5014_v25 = vld [vmem:[%s7275_s0 + $0x10] sm:$0xff]  ;;  %v5016_v32 = vld [vmem:[%s7275_s0 + $0x18] sm:$0xff]  ;;  %v5018_v39 = vld [vmem:[%s7275_s0 + $0x20] sm:$0xff] }
   0x5   :  { %6067 = vmatprep.subr.bf16.mxu0 %v6445_v0  ;;  %6076 = vmatprep.subr.bf16.mxu1 %v6445_v0  ;;  %vm111_vm2 = vcmp.ge.s32.totalorder %v6534_v17, 8  ;;  %vm112_vm3 = vcmp.lt.s32.totalorder %v6534_v17, 16  ;;  %vm30_vm5 = vcmp.lt.s32.totalorder %v6534_v17, 8  ;;  %vm196_vm6 = vcmp.lt.s32.totalorder %v6534_v17, 24  ;;  %v5020_v46 = vld [vmem:[%s7275_s0 + $0x28] sm:$0xff]  ;;  %v442_v53 = vld [vmem:[%s7276_s2] sm:$0xff] }
   0x6   :  { %vm113_vm4 = vmand %vm111_vm2, %vm112_vm3  ;;  %vm278_vm8 = vcmp.lt.s32.totalorder %v6534_v17, 32  ;;  %vm360_vm10 = vcmp.lt.s32.totalorder %v6534_v17, 40  ;;  %v520_v49 = vld [vmem:[%s7276_s2 + $0x8] sm:$0xff]  ;;  %v5024_v57 = vld [vmem:[%s7275_s0 + $0x30] sm:$0xff]  ;;  %vm4518_vm13 = vcmp.ge.s32.totalorder %v6534_v17, 16  ;;  %vm4519_vm14 = vcmp.lt.s32.totalorder %v6534_v17, 48 }
   0x7   :  { %vm197_vm7 = vmand %vm111_vm2, %vm196_vm6  ;;  %v749_v59 = vld [vmem:[%s7276_s2 + $0x10] sm:$0xff]  ;;  %v903_v14 = vld [vmem:[%s7276_s2 + $0x18] sm:$0xff] }
   0x8   :  { %6069 = vmatpush3.bf16.msra.mxu0 %v6495_v7  ;;  %6078 = vmatpush3.bf16.msra.mxu1 %v6495_v7  ;;  %vm279_vm9 = vmand %vm111_vm2, %vm278_vm8 }
   0x9   :  { %6070 = vmatprep.subr.bf16.mxu0 %v6445_v0  ;;  %6079 = vmatprep.subr.bf16.mxu1 %v6445_v0  ;;  %vm361_vm11 = vmand %vm111_vm2, %vm360_vm10  ;;  %vm4675_vm2 = vcmp.ge.s32.totalorder %v6534_v17, 24 }
   0xa   :  { %vm4520_vm15 = vmand %vm4518_vm13, %vm4519_vm14 }
   0xb   :  { %vm4676_vm3 = vmand %vm4675_vm2, %vm4519_vm14 }
   0xc   :  { %6072 = vmatpush3.bf16.msra.mxu0 %v6507_v10  ;;  %6081 = vmatpush3.bf16.msra.mxu1 %v6507_v10 }
   0xd   :  { %6082 = vmatprep.subr.bf16.mxu0 %v6445_v0  ;;  %6091 = vmatprep.subr.bf16.mxu1 %v6445_v0 }
   0xf   :  { %5417 = vmatmul.mubr.msk.f32.vlgmr.msra.gmra.mrb[0].mxu0 %vm36_vm1, %v31_v11 }
  0x10   :  { %6084 = vmatpush3.bf16.msra.mxu0 %v6486_v5  ;;  %5446 = vmatprep.mubr.msk.f32.mxu0 %vm6446_vm0, %v6447_v4 }
  0x11   :  { %6085 = vmatprep.subr.bf16.mxu0 %v6445_v0 }
  0x14   :  { %6087 = vmatpush3.bf16.msra.mxu0 %v6495_v7 }
  0x15   :  { %6088 = vmatprep.subr.bf16.mxu0 %v6445_v0 }
  0x18   :  { %6090 = vmatpush3.bf16.msra.mxu0 %v6507_v10 }
  0x19   :  { %6100 = vmatprep.subr.bf16.mxu0 %v6445_v0 }
  0xe2   :  { %v106_v13 = vpop.f32.mrb[0].mxu0 }
  0xe3   :  { %v107_v15 = vadd.f32 %v6531_v12, %v106_v13  ;;  %v5418_v16 = vpop.f32.mrb[1].mxu0 }
  0xe5   :  { %6374 = vtanh.f32 %v107_v15 }
  0xef   :  { %v6375_v19 = vpop.eup %6374 }
  0xf0   :  { %v116_v20 = vsel %vm113_vm4, %v6375_v19, %v31_v11  ;;  %v5027_v11 = vld [vmem:[%s7275_s0 + $0x38] sm:$0xff]  ;;  %vm4831_vm4 = vcmp.ge.s32.totalorder %v6534_v17, 32 }
  0xf1   :  { %v121_v21 = vsel %vm30_vm5, %v5012_v18, %v116_v20 }
  0xf2   :  { %5432 = vmatmul.mubr.msk.f32.vlgmr.msra.gmra.mrb[0].mxu1 %vm36_vm1, %v121_v21 }
  0xf3   :  { %6093 = vmatpush3.bf16.msra.mxu1 %v6486_v5  ;;  %5461 = vmatprep.mubr.msk.f32.mxu1 %vm6446_vm0, %v6447_v4 }
  0xf4   :  { %6094 = vmatprep.subr.bf16.mxu1 %v6445_v0 }
  0xf7   :  { %6096 = vmatpush3.bf16.msra.mxu1 %v6495_v7 }
  0xf8   :  { %6097 = vmatprep.subr.bf16.mxu1 %v6445_v0 }
  0xfb   :  { %6099 = vmatpush3.bf16.msra.mxu1 %v6507_v10 }
  0xfc   :  { %6109 = vmatprep.subr.bf16.mxu1 %v6445_v0 }
 0x1c5   :  { %v191_v22 = vpop.f32.mrb[0].mxu1 }
 0x1c6   :  { %v192_v23 = vadd.f32 %v6531_v12, %v191_v22  ;;  %v5433_v24 = vpop.f32.mrb[1].mxu1 }
 0x1c7   :  { %v5030_v24 = vld [vmem:[%s7275_s0 + $0x40] sm:$0xff] }
 0x1c8   :  { %6376 = vtanh.f32 %v192_v23 }
 0x1d2   :  { %v6377_v26 = vpop.eup %6376 }
 0x1d3   :  { %v200_v27 = vsel %vm197_vm7, %v6377_v26, %v121_v21  ;;  %v1057_v26 = vld [vmem:[%s7276_s2 + $0x20] sm:$0xff] }
 0x1d4   :  { %v203_v28 = vsel %vm30_vm5, %v5014_v25, %v200_v27 }
 0x1d5   :  { %5447 = vmatmul.mubr.msk.f32.vlgmr.msra.gmra.mrb[2].mxu0 %vm36_vm1, %v203_v28 }
 0x1d6   :  { %6102 = vmatpush3.bf16.msra.mxu0 %v6486_v5  ;;  %5476 = vmatprep.mubr.msk.f32.mxu0 %vm6446_vm0, %v6447_v4 }
 0x1d7   :  { %6103 = vmatprep.subr.bf16.mxu0 %v6445_v0 }
 0x1da   :  { %6105 = vmatpush3.bf16.msra.mxu0 %v6495_v7 }
 0x1db   :  { %6106 = vmatprep.subr.bf16.mxu0 %v6445_v0 }
 0x1de   :  { %6108 = vmatpush3.bf16.msra.mxu0 %v6507_v10 }
 0x1df   :  { %5494 = vmatprep.subr.mxu0 %v6447_v4 }
 0x2a8   :  { %v273_v29 = vpop.f32.mrb[2].mxu0 }
 0x2a9   :  { %v274_v30 = vadd.f32 %v6531_v12, %v273_v29  ;;  %v5448_v31 = vpop.f32.mrb[3].mxu0 }
 0x2ab   :  { %6378 = vtanh.f32 %v274_v30 }
 0x2b5   :  { %v6379_v33 = vpop.eup %6378 }
 0x2b6   :  { %v282_v34 = vsel %vm279_vm9, %v6379_v33, %v203_v28 }
 0x2b7   :  { %v285_v35 = vsel %vm30_vm5, %v5016_v32, %v282_v34 }
 0x2b8   :  { %5462 = vmatmul.mubr.msk.f32.vlgmr.msra.gmra.mrb[2].mxu1 %vm36_vm1, %v285_v35 }
 0x2b9   :  { %6111 = vmatpush3.bf16.msra.mxu1 %v6486_v5  ;;  %5491 = vmatprep.mubr.msk.f32.mxu1 %vm6446_vm0, %v6447_v4 }
 0x2ba   :  { %6112 = vmatprep.subr.bf16.mxu1 %v6445_v0 }
 0x2bd   :  { %6114 = vmatpush3.bf16.msra.mxu1 %v6495_v7 }
 0x2be   :  { %6115 = vmatprep.subr.bf16.mxu1 %v6445_v0 }
 0x2c1   :  { %6117 = vmatpush3.bf16.msra.mxu1 %v6507_v10 }
 0x2c2   :  { %5499 = vmatprep.subr.mxu1 %v6447_v4 }
 0x38b   :  { %v355_v36 = vpop.f32.mrb[2].mxu1 }
 0x38c   :  { %v356_v37 = vadd.f32 %v6531_v12, %v355_v36  ;;  %v5463_v38 = vpop.f32.mrb[3].mxu1 }
 0x38e   :  { %6380 = vtanh.f32 %v356_v37  ;;  %v1211_v37 = vld [vmem:[%s7276_s2 + $0x28] sm:$0xff] }
 0x398   :  { %v6381_v40 = vpop.eup %6380 }
 0x399   :  { %v364_v41 = vsel %vm361_vm11, %v6381_v40, %v285_v35  ;;  %v5033_v35 = vld [vmem:[%s7275_s0 + $0x48] sm:$0xff] }
 0x39a   :  { %v367_v42 = vsel %vm30_vm5, %v5018_v39, %v364_v41 }
 0x39b   :  { %5477 = vmatmul.mubr.msk.f32.vlgmr.msra.gmra.mrb[4].mxu0 %vm36_vm1, %v367_v42 }
 0x39c   :  { %5496 = vmatprep.mubr.msk.f32.mxu0 %vm6446_vm0, %v6447_v4  ;;  %5495 = vmatpush3.msra.mxu0 %v520_v49 }
 0x39d   :  { %6118 = vmatprep.subr.bf16.mxu0 %v6445_v0 }
 0x46e   :  { %v437_v43 = vpop.f32.mrb[4].mxu0 }
 0x46f   :  { %v438_v44 = vadd.f32 %v6531_v12, %v437_v43  ;;  %v5478_v45 = vpop.f32.mrb[5].mxu0 }
 0x471   :  { %6382 = vtanh.f32 %v438_v44 }
 0x47b   :  { %v6383_v47 = vpop.eup %6382 }
 0x47c   :  { %v445_v48 = vsel %vm30_vm5, %v5020_v46, %v6383_v47  ;;  %v5036_v46 = vld [vmem:[%s7275_s0 + $0x50] sm:$0xff] }
 0x47d   :  { %5492 = vmatmul.mubr.msk.f32.vlgmr.msra.gmra.mrb[4].mxu1 %vm36_vm1, %v445_v48  ;;  %v1365_v48 = vld [vmem:[%s7276_s2 + $0x30] sm:$0xff] }
 0x47e   :  { %5501 = vmatprep.mubr.msk.f32.mxu1 %vm6446_vm0, %v6447_v4  ;;  %5500 = vmatpush3.msra.mxu1 %v442_v53 }
 0x47f   :  { %5519 = vmatprep.subr.mxu1 %v6447_v4 }
 0x550   :  { %v515_v50 = vpop.f32.mrb[4].mxu1 }
 0x551   :  { %v516_v51 = vadd.f32 %v6531_v12, %v515_v50  ;;  %v5493_v52 = vpop.f32.mrb[5].mxu1 }
 0x553   :  { %6384 = vtanh.f32 %v516_v51 }
 0x55d   :  { %v6385_v54 = vpop.eup %6384 }
 0x55e   :  { %522 = vrot.lane.b32.xlu0 %v6385_v54, %s6448_s19  ;;  %v674_v58 = vsel %vm30_vm5, %v5024_v57, %v6385_v54  ;;  %v5039_v57 = vld [vmem:[%s7275_s0 + $0x58] sm:$0xff] }
 0x562   :  { %598 = vrot.lane.b32.xlu0 %v6383_v47, %s6448_s19 }
 0x5d0   :  { %v523_v55 = vpop.permute.xlu0 %522 }
 0x5d1   :  { %5497 = vmatmul.mubr.msk.f32.vlgmr.msra.gmra.mrb[6].mxu0 %vm524_vm12, %v523_v55 }
 0x5d2   :  { %6120 = vmatpush3.bf16.msra.mxu0 %v6486_v5  ;;  %5516 = vmatprep.mubr.msk.f32.mxu0 %vm6446_vm0, %v6447_v4 }
 0x5d3   :  { %6121 = vmatprep.subr.bf16.mxu0 %v6445_v0 }
 0x5d4   :  { %v599_v56 = vpop.permute.xlu0 %598 }
 0x5d5   :  { %5502 = vmatmul.mubr.msk.f32.vlgmr.msra.gmra.mrb[6].mxu1 %vm524_vm12, %v599_v56 }
 0x5d6   :  { %6123 = vmatpush3.bf16.msra.mxu0 %v6495_v7  ;;  %5521 = vmatprep.mubr.msk.f32.mxu1 %vm6446_vm0, %v6447_v4 }
 0x5d7   :  { %6124 = vmatprep.subr.bf16.mxu0 %v6445_v0  ;;  %5520 = vmatpush3.msra.mxu1 %v749_v59  ;;  %v1519_v59 = vld [vmem:[%s7276_s2 + $0x38] sm:$0xff] }
 0x5d8   :  { %6127 = vmatprep.subr.bf16.mxu1 %v6445_v0 }
 0x5da   :  { %6126 = vmatpush3.bf16.msra.mxu0 %v6507_v10 }
 0x5db   :  { %5539 = vmatprep.subr.mxu0 %v6447_v4 }
 0x5dd   :  { %5517 = vmatmul.mubr.msk.f32.vlgmr.msra.gmra.mrb[8].mxu0 %vm36_vm1, %v674_v58 }
 0x5de   :  { %5541 = vmatprep.mubr.msk.f32.mxu0 %vm6446_vm0, %v6447_v4  ;;  %5540 = vmatpush3.msra.mxu0 %v903_v14 }
 0x5df   :  { %6136 = vmatprep.subr.bf16.mxu0 %v6445_v0 }
 0x6a4   :  { %v593_v60 = vpop.f32.mrb[6].mxu0 }
 0x6a5   :  { %v5498_v61 = vpop.f32.mrb[7].mxu0 }
 0x6a8   :  { %v668_v62 = vpop.f32.mrb[6].mxu1 }
 0x6a9   :  { %v669_v63 = vadd.f32 %v668_v62, %v593_v60  ;;  %v5503_v1 = vpop.f32.mrb[7].mxu1 }
 0x6b0   :  { %v744_v2 = vpop.f32.mrb[8].mxu0 }
 0x6b1   :  { %v745_v3 = vadd.f32 %v6531_v12, %v744_v2  ;;  %v5518_v6 = vpop.f32.mrb[9].mxu0 }
 0x6b3   :  { %6386 = vtanh.f32 %v745_v3 }
 0x6bd   :  { %v6387_v8 = vpop.eup %6386 }
 0x6be   :  { %751 = vrot.lane.b32.xlu1 %v6387_v8, %s6448_s19  ;;  %v828_v13 = vsel %vm30_vm5, %v5027_v11, %v6387_v8  ;;  %v5042_v8 = vld [vmem:[%s7275_s0 + $0x60] sm:$0xff] }
 0x6bf   :  { %v1673_v11 = vld [vmem:[%s7276_s2 + $0x40] sm:$0xff] }
 0x730   :  { %v752_v9 = vpop.permute.xlu1 %751 }
 0x731   :  { %5522 = vmatmul.mubr.msk.f32.vlgmr.msra.gmra.mrb[8].mxu1 %vm524_vm12, %v752_v9 }
 0x732   :  { %6129 = vmatpush3.bf16.msra.mxu1 %v6486_v5  ;;  %5536 = vmatprep.mubr.msk.f32.mxu1 %vm6446_vm0, %v6447_v4 }
 0x733   :  { %6130 = vmatprep.subr.bf16.mxu1 %v6445_v0 }
 0x736   :  { %6132 = vmatpush3.bf16.msra.mxu1 %v6495_v7 }
 0x737   :  { %6133 = vmatprep.subr.bf16.mxu1 %v6445_v0 }
 0x73a   :  { %6135 = vmatpush3.bf16.msra.mxu1 %v6507_v10 }
 0x73b   :  { %5559 = vmatprep.subr.mxu1 %v6447_v4 }
 0x73d   :  { %5537 = vmatmul.mubr.msk.f32.vlgmr.msra.gmra.mrb[10].mxu1 %vm36_vm1, %v828_v13 }
 0x73e   :  { %5561 = vmatprep.mubr.msk.f32.mxu1 %vm6446_vm0, %v6447_v4  ;;  %5560 = vmatpush3.msra.mxu1 %v1057_v26 }
 0x73f   :  { %6145 = vmatprep.subr.bf16.mxu1 %v6445_v0 }
 0x804   :  { %v821_v15 = vpop.f32.mrb[8].mxu1 }
 0x805   :  { %v825_v16 = vadd.f32 %v821_v15, %v669_v63  ;;  %v5523_v18 = vpop.f32.mrb[9].mxu1 }
 0x810   :  { %v898_v19 = vpop.f32.mrb[10].mxu1 }
 0x811   :  { %v899_v20 = vadd.f32 %v6531_v12, %v898_v19  ;;  %v5538_v21 = vpop.f32.mrb[11].mxu1 }
 0x813   :  { %6388 = vtanh.f32 %v899_v20 }
 0x81d   :  { %v6389_v22 = vpop.eup %6388 }
 0x81e   :  { %905 = vrot.lane.b32.xlu1 %v6389_v22, %s6448_s19  ;;  %v982_v25 = vsel %vm30_vm5, %v5030_v24, %v6389_v22  ;;  %v5045_v22 = vld [vmem:[%s7275_s0 + $0x68] sm:$0xff] }
 0x81f   :  { %v1827_v24 = vld [vmem:[%s7276_s2 + $0x48] sm:$0xff] }
 0x890   :  { %v906_v23 = vpop.permute.xlu1 %905 }
 0x891   :  { %5542 = vmatmul.mubr.msk.f32.vlgmr.msra.gmra.mrb[10].mxu0 %vm524_vm12, %v906_v23 }
 0x892   :  { %6138 = vmatpush3.bf16.msra.mxu0 %v6486_v5  ;;  %5556 = vmatprep.mubr.msk.f32.mxu0 %vm6446_vm0, %v6447_v4 }
 0x893   :  { %6139 = vmatprep.subr.bf16.mxu0 %v6445_v0 }
 0x896   :  { %6141 = vmatpush3.bf16.msra.mxu0 %v6495_v7 }
 0x897   :  { %6142 = vmatprep.subr.bf16.mxu0 %v6445_v0 }
 0x89a   :  { %6144 = vmatpush3.bf16.msra.mxu0 %v6507_v10 }
 0x89b   :  { %5579 = vmatprep.subr.mxu0 %v6447_v4 }
 0x89d   :  { %5557 = vmatmul.mubr.msk.f32.vlgmr.msra.gmra.mrb[12].mxu0 %vm36_vm1, %v982_v25 }
 0x89e   :  { %5581 = vmatprep.mubr.msk.f32.mxu0 %vm6446_vm0, %v6447_v4  ;;  %5580 = vmatpush3.msra.mxu0 %v1211_v37 }
 0x89f   :  { %6154 = vmatprep.subr.bf16.mxu0 %v6445_v0 }
 0x964   :  { %v975_v27 = vpop.f32.mrb[10].mxu0 }
 0x965   :  { %v979_v28 = vadd.f32 %v975_v27, %v825_v16  ;;  %v5543_v29 = vpop.f32.mrb[11].mxu0 }
 0x970   :  { %v1052_v30 = vpop.f32.mrb[12].mxu0 }
 0x971   :  { %v1053_v31 = vadd.f32 %v6531_v12, %v1052_v30  ;;  %v5558_v32 = vpop.f32.mrb[13].mxu0 }
 0x973   :  { %6390 = vtanh.f32 %v1053_v31 }
 0x97d   :  { %v6391_v33 = vpop.eup %6390 }
 0x97e   :  { %1059 = vrot.lane.b32.xlu0 %v6391_v33, %s6448_s19  ;;  %v1136_v36 = vsel %vm30_vm5, %v5033_v35, %v6391_v33  ;;  %v5048_v33 = vld [vmem:[%s7275_s0 + $0x70] sm:$0xff] }
 0x97f   :  { %v1981_v35 = vld [vmem:[%s7276_s2 + $0x50] sm:$0xff] }
 0x9f0   :  { %v1060_v34 = vpop.permute.xlu0 %1059 }
 0x9f1   :  { %5562 = vmatmul.mubr.msk.f32.vlgmr.msra.gmra.mrb[12].mxu1 %vm524_vm12, %v1060_v34 }
 0x9f2   :  { %6147 = vmatpush3.bf16.msra.mxu1 %v6486_v5  ;;  %5576 = vmatprep.mubr.msk.f32.mxu1 %vm6446_vm0, %v6447_v4 }
 0x9f3   :  { %6148 = vmatprep.subr.bf16.mxu1 %v6445_v0 }
 0x9f6   :  { %6150 = vmatpush3.bf16.msra.mxu1 %v6495_v7 }
 0x9f7   :  { %6151 = vmatprep.subr.bf16.mxu1 %v6445_v0 }
 0x9fa   :  { %6153 = vmatpush3.bf16.msra.mxu1 %v6507_v10 }
 0x9fb   :  { %5599 = vmatprep.subr.mxu1 %v6447_v4 }
 0x9fd   :  { %5577 = vmatmul.mubr.msk.f32.vlgmr.msra.gmra.mrb[14].mxu1 %vm36_vm1, %v1136_v36 }
 0x9fe   :  { %5601 = vmatprep.mubr.msk.f32.mxu1 %vm6446_vm0, %v6447_v4  ;;  %5600 = vmatpush3.msra.mxu1 %v1365_v48 }
 0x9ff   :  { %6163 = vmatprep.subr.bf16.mxu1 %v6445_v0 }
 0xac4   :  { %v1129_v38 = vpop.f32.mrb[12].mxu1 }
 0xac5   :  { %v1133_v39 = vadd.f32 %v1129_v38, %v979_v28  ;;  %v5563_v40 = vpop.f32.mrb[13].mxu1 }
 0xad0   :  { %v1206_v41 = vpop.f32.mrb[14].mxu1 }
 0xad1   :  { %v1207_v42 = vadd.f32 %v6531_v12, %v1206_v41  ;;  %v5578_v43 = vpop.f32.mrb[15].mxu1 }
 0xad3   :  { %6392 = vtanh.f32 %v1207_v42 }
 0xadd   :  { %v6393_v44 = vpop.eup %6392 }
 0xade   :  { %1213 = vrot.lane.b32.xlu1 %v6393_v44, %s6448_s19  ;;  %v1290_v47 = vsel %vm30_vm5, %v5036_v46, %v6393_v44  ;;  %v5051_v44 = vld [vmem:[%s7275_s0 + $0x78] sm:$0xff] }
 0xadf   :  { %v2135_v46 = vld [vmem:[%s7276_s2 + $0x58] sm:$0xff] }
 0xb50   :  { %v1214_v45 = vpop.permute.xlu1 %1213 }
 0xb51   :  { %5582 = vmatmul.mubr.msk.f32.vlgmr.msra.gmra.mrb[14].mxu0 %vm524_vm12, %v1214_v45 }
 0xb52   :  { %6156 = vmatpush3.bf16.msra.mxu0 %v6486_v5  ;;  %5596 = vmatprep.mubr.msk.f32.mxu0 %vm6446_vm0, %v6447_v4 }
 0xb53   :  { %6157 = vmatprep.subr.bf16.mxu0 %v6445_v0 }
 0xb56   :  { %6159 = vmatpush3.bf16.msra.mxu0 %v6495_v7 }
 0xb57   :  { %6160 = vmatprep.subr.bf16.mxu0 %v6445_v0 }
 0xb5a   :  { %6162 = vmatpush3.bf16.msra.mxu0 %v6507_v10 }
 0xb5b   :  { %5619 = vmatprep.subr.mxu0 %v6447_v4 }
 0xb5d   :  { %5597 = vmatmul.mubr.msk.f32.vlgmr.msra.gmra.mrb[16].mxu0 %vm36_vm1, %v1290_v47 }
 0xb5e   :  { %5621 = vmatprep.mubr.msk.f32.mxu0 %vm6446_vm0, %v6447_v4  ;;  %5620 = vmatpush3.msra.mxu0 %v1519_v59 }
 0xb5f   :  { %6172 = vmatprep.subr.bf16.mxu0 %v6445_v0 }
 0xc24   :  { %v1283_v49 = vpop.f32.mrb[14].mxu0 }
 0xc25   :  { %v1287_v50 = vadd.f32 %v1283_v49, %v1133_v39  ;;  %v5583_v51 = vpop.f32.mrb[15].mxu0 }
 0xc30   :  { %v1360_v52 = vpop.f32.mrb[16].mxu0 }
 0xc31   :  { %v1361_v53 = vadd.f32 %v6531_v12, %v1360_v52  ;;  %v5598_v54 = vpop.f32.mrb[17].mxu0 }
 0xc33   :  { %6394 = vtanh.f32 %v1361_v53 }
 0xc3d   :  { %v6395_v55 = vpop.eup %6394 }
 0xc3e   :  { %1367 = vrot.lane.b32.xlu0 %v6395_v55, %s6448_s19  ;;  %v1444_v58 = vsel %vm30_vm5, %v5039_v57, %v6395_v55  ;;  %v5054_v55 = vld [vmem:[%s7275_s0 + $0x80] sm:$0xff] }
 0xc3f   :  { %v2289_v57 = vld [vmem:[%s7276_s2 + $0x60] sm:$0xff] }
 0xcb0   :  { %v1368_v56 = vpop.permute.xlu0 %1367 }
 0xcb1   :  { %5602 = vmatmul.mubr.msk.f32.vlgmr.msra.gmra.mrb[16].mxu1 %vm524_vm12, %v1368_v56 }
 0xcb2   :  { %6165 = vmatpush3.bf16.msra.mxu1 %v6486_v5  ;;  %5616 = vmatprep.mubr.msk.f32.mxu1 %vm6446_vm0, %v6447_v4 }
 0xcb3   :  { %6166 = vmatprep.subr.bf16.mxu1 %v6445_v0 }
 0xcb6   :  { %6168 = vmatpush3.bf16.msra.mxu1 %v6495_v7 }
 0xcb7   :  { %6169 = vmatprep.subr.bf16.mxu1 %v6445_v0 }
 0xcba   :  { %6171 = vmatpush3.bf16.msra.mxu1 %v6507_v10 }
 0xcbb   :  { %5639 = vmatprep.subr.mxu1 %v6447_v4 }
 0xcbd   :  { %5617 = vmatmul.mubr.msk.f32.vlgmr.msra.gmra.mrb[18].mxu1 %vm36_vm1, %v1444_v58 }
 0xcbe   :  { %5641 = vmatprep.mubr.msk.f32.mxu1 %vm6446_vm0, %v6447_v4  ;;  %5640 = vmatpush3.msra.mxu1 %v1673_v11 }
 0xcbf   :  { %6181 = vmatprep.subr.bf16.mxu1 %v6445_v0 }
 0xd84   :  { %v1437_v60 = vpop.f32.mrb[16].mxu1 }
 0xd85   :  { %v1441_v61 = vadd.f32 %v1437_v60, %v1287_v50  ;;  %v5603_v62 = vpop.f32.mrb[17].mxu1 }
 0xd90   :  { %v1514_v63 = vpop.f32.mrb[18].mxu1 }
 0xd91   :  { %v1515_v1 = vadd.f32 %v6531_v12, %v1514_v63  ;;  %v5618_v2 = vpop.f32.mrb[19].mxu1 }
 0xd93   :  { %6396 = vtanh.f32 %v1515_v1 }
 0xd9d   :  { %v6397_v3 = vpop.eup %6396 }
 0xd9e   :  { %1521 = vrot.lane.b32.xlu1 %v6397_v3, %s6448_s19  ;;  %v1598_v9 = vsel %vm30_vm5, %v5042_v8, %v6397_v3  ;;  %v5057_v3 = vld [vmem:[%s7275_s0 + $0x88] sm:$0xff] }
 0xd9f   :  { %v2443_v8 = vld [vmem:[%s7276_s2 + $0x68] sm:$0xff] }
 0xe10   :  { %v1522_v6 = vpop.permute.xlu1 %1521 }
 0xe11   :  { %5622 = vmatmul.mubr.msk.f32.vlgmr.msra.gmra.mrb[18].mxu0 %vm524_vm12, %v1522_v6 }
 0xe12   :  { %6174 = vmatpush3.bf16.msra.mxu0 %v6486_v5  ;;  %5636 = vmatprep.mubr.msk.f32.mxu0 %vm6446_vm0, %v6447_v4 }
 0xe13   :  { %6175 = vmatprep.subr.bf16.mxu0 %v6445_v0 }
 0xe16   :  { %6177 = vmatpush3.bf16.msra.mxu0 %v6495_v7 }
 0xe17   :  { %6178 = vmatprep.subr.bf16.mxu0 %v6445_v0 }
 0xe1a   :  { %6180 = vmatpush3.bf16.msra.mxu0 %v6507_v10 }
 0xe1b   :  { %5659 = vmatprep.subr.mxu0 %v6447_v4 }
 0xe1d   :  { %5637 = vmatmul.mubr.msk.f32.vlgmr.msra.gmra.mrb[20].mxu0 %vm36_vm1, %v1598_v9 }
 0xe1e   :  { %5661 = vmatprep.mubr.msk.f32.mxu0 %vm6446_vm0, %v6447_v4  ;;  %5660 = vmatpush3.msra.mxu0 %v1827_v24 }
 0xe1f   :  { %6190 = vmatprep.subr.bf16.mxu0 %v6445_v0 }
 0xee4   :  { %v1591_v13 = vpop.f32.mrb[18].mxu0 }
 0xee5   :  { %v1595_v14 = vadd.f32 %v1591_v13, %v1441_v61  ;;  %v5623_v15 = vpop.f32.mrb[19].mxu0 }
 0xef0   :  { %v1668_v16 = vpop.f32.mrb[20].mxu0 }
 0xef1   :  { %v1669_v18 = vadd.f32 %v6531_v12, %v1668_v16  ;;  %v5638_v19 = vpop.f32.mrb[21].mxu0 }
 0xef3   :  { %6398 = vtanh.f32 %v1669_v18 }
 0xefd   :  { %v6399_v20 = vpop.eup %6398 }
 0xefe   :  { %1675 = vrot.lane.b32.xlu0 %v6399_v20, %s6448_s19  ;;  %v1752_v23 = vsel %vm30_vm5, %v5045_v22, %v6399_v20  ;;  %v5060_v20 = vld [vmem:[%s7275_s0 + $0x90] sm:$0xff] }
 0xeff   :  { %v2597_v22 = vld [vmem:[%s7276_s2 + $0x70] sm:$0xff] }
 0xf70   :  { %v1676_v21 = vpop.permute.xlu0 %1675 }
 0xf71   :  { %5642 = vmatmul.mubr.msk.f32.vlgmr.msra.gmra.mrb[20].mxu1 %vm524_vm12, %v1676_v21 }
 0xf72   :  { %6183 = vmatpush3.bf16.msra.mxu1 %v6486_v5  ;;  %5656 = vmatprep.mubr.msk.f32.mxu1 %vm6446_vm0, %v6447_v4 }
 0xf73   :  { %6184 = vmatprep.subr.bf16.mxu1 %v6445_v0 }
 0xf76   :  { %6186 = vmatpush3.bf16.msra.mxu1 %v6495_v7 }
 0xf77   :  { %6187 = vmatprep.subr.bf16.mxu1 %v6445_v0 }
 0xf7a   :  { %6189 = vmatpush3.bf16.msra.mxu1 %v6507_v10 }
 0xf7b   :  { %5679 = vmatprep.subr.mxu1 %v6447_v4 }
 0xf7d   :  { %5657 = vmatmul.mubr.msk.f32.vlgmr.msra.gmra.mrb[22].mxu1 %vm36_vm1, %v1752_v23 }
 0xf7e   :  { %5681 = vmatprep.mubr.msk.f32.mxu1 %vm6446_vm0, %v6447_v4  ;;  %5680 = vmatpush3.msra.mxu1 %v1981_v35 }
 0xf7f   :  { %6199 = vmatprep.subr.bf16.mxu1 %v6445_v0 }
0x1044   :  { %v1745_v25 = vpop.f32.mrb[20].mxu1 }
0x1045   :  { %v1749_v26 = vadd.f32 %v1745_v25, %v1595_v14  ;;  %v5643_v27 = vpop.f32.mrb[21].mxu1 }
0x1050   :  { %v1822_v28 = vpop.f32.mrb[22].mxu1 }
0x1051   :  { %v1823_v29 = vadd.f32 %v6531_v12, %v1822_v28  ;;  %v5658_v30 = vpop.f32.mrb[23].mxu1 }
0x1053   :  { %6400 = vtanh.f32 %v1823_v29 }
0x105d   :  { %v6401_v31 = vpop.eup %6400 }
0x105e   :  { %1829 = vrot.lane.b32.xlu1 %v6401_v31, %s6448_s19  ;;  %v1906_v34 = vsel %vm30_vm5, %v5048_v33, %v6401_v31  ;;  %v5063_v31 = vld [vmem:[%s7275_s0 + $0x98] sm:$0xff] }
0x105f   :  { %v2751_v33 = vld [vmem:[%s7276_s2 + $0x78] sm:$0xff] }
0x10d0   :  { %v1830_v32 = vpop.permute.xlu1 %1829 }
0x10d1   :  { %5662 = vmatmul.mubr.msk.f32.vlgmr.msra.gmra.mrb[22].mxu0 %vm524_vm12, %v1830_v32 }
0x10d2   :  { %6192 = vmatpush3.bf16.msra.mxu0 %v6486_v5  ;;  %5676 = vmatprep.mubr.msk.f32.mxu0 %vm6446_vm0, %v6447_v4 }
0x10d3   :  { %6193 = vmatprep.subr.bf16.mxu0 %v6445_v0 }
0x10d6   :  { %6195 = vmatpush3.bf16.msra.mxu0 %v6495_v7 }
0x10d7   :  { %6196 = vmatprep.subr.bf16.mxu0 %v6445_v0 }
0x10da   :  { %6198 = vmatpush3.bf16.msra.mxu0 %v6507_v10 }
0x10db   :  { %5699 = vmatprep.subr.mxu0 %v6447_v4 }
0x10dd   :  { %5677 = vmatmul.mubr.msk.f32.vlgmr.msra.gmra.mrb[24].mxu0 %vm36_vm1, %v1906_v34 }
0x10de   :  { %5701 = vmatprep.mubr.msk.f32.mxu0 %vm6446_vm0, %v6447_v4  ;;  %5700 = vmatpush3.msra.mxu0 %v2135_v46 }
0x10df   :  { %6208 = vmatprep.subr.bf16.mxu0 %v6445_v0 }
0x11a4   :  { %v1899_v36 = vpop.f32.mrb[22].mxu0 }
0x11a5   :  { %v1903_v37 = vadd.f32 %v1899_v36, %v1749_v26  ;;  %v5663_v38 = vpop.f32.mrb[23].mxu0 }
0x11b0   :  { %v1976_v39 = vpop.f32.mrb[24].mxu0 }
0x11b1   :  { %v1977_v40 = vadd.f32 %v6531_v12, %v1976_v39  ;;  %v5678_v41 = vpop.f32.mrb[25].mxu0 }
0x11b3   :  { %6402 = vtanh.f32 %v1977_v40 }
0x11bd   :  { %v6403_v42 = vpop.eup %6402 }
0x11be   :  { %1983 = vrot.lane.b32.xlu0 %v6403_v42, %s6448_s19  ;;  %v2060_v45 = vsel %vm30_vm5, %v5051_v44, %v6403_v42  ;;  %v5066_v42 = vld [vmem:[%s7275_s0 + $0xa0] sm:$0xff] }
0x11bf   :  { %v2905_v44 = vld [vmem:[%s7276_s2 + $0x80] sm:$0xff] }
0x1230   :  { %v1984_v43 = vpop.permute.xlu0 %1983 }
0x1231   :  { %5682 = vmatmul.mubr.msk.f32.vlgmr.msra.gmra.mrb[24].mxu1 %vm524_vm12, %v1984_v43 }
0x1232   :  { %6201 = vmatpush3.bf16.msra.mxu1 %v6486_v5  ;;  %5696 = vmatprep.mubr.msk.f32.mxu1 %vm6446_vm0, %v6447_v4 }
0x1233   :  { %6202 = vmatprep.subr.bf16.mxu1 %v6445_v0 }
0x1236   :  { %6204 = vmatpush3.bf16.msra.mxu1 %v6495_v7 }
0x1237   :  { %6205 = vmatprep.subr.bf16.mxu1 %v6445_v0 }
0x123a   :  { %6207 = vmatpush3.bf16.msra.mxu1 %v6507_v10 }
0x123b   :  { %5719 = vmatprep.subr.mxu1 %v6447_v4 }
0x123d   :  { %5697 = vmatmul.mubr.msk.f32.vlgmr.msra.gmra.mrb[26].mxu1 %vm36_vm1, %v2060_v45 }
0x123e   :  { %5721 = vmatprep.mubr.msk.f32.mxu1 %vm6446_vm0, %v6447_v4  ;;  %5720 = vmatpush3.msra.mxu1 %v2289_v57 }
0x123f   :  { %6217 = vmatprep.subr.bf16.mxu1 %v6445_v0 }
0x1304   :  { %v2053_v47 = vpop.f32.mrb[24].mxu1 }
0x1305   :  { %v2057_v48 = vadd.f32 %v2053_v47, %v1903_v37  ;;  %v5683_v49 = vpop.f32.mrb[25].mxu1 }
0x1310   :  { %v2130_v50 = vpop.f32.mrb[26].mxu1 }
0x1311   :  { %v2131_v51 = vadd.f32 %v6531_v12, %v2130_v50  ;;  %v5698_v52 = vpop.f32.mrb[27].mxu1 }
0x1313   :  { %6404 = vtanh.f32 %v2131_v51 }
0x131d   :  { %v6405_v53 = vpop.eup %6404 }
0x131e   :  { %2137 = vrot.lane.b32.xlu1 %v6405_v53, %s6448_s19  ;;  %v2214_v56 = vsel %vm30_vm5, %v5054_v55, %v6405_v53  ;;  %v5069_v53 = vld [vmem:[%s7275_s0 + $0xa8] sm:$0xff] }
0x131f   :  { %v3059_v55 = vld [vmem:[%s7276_s2 + $0x88] sm:$0xff] }
0x1390   :  { %v2138_v54 = vpop.permute.xlu1 %2137 }
0x1391   :  { %5702 = vmatmul.mubr.msk.f32.vlgmr.msra.gmra.mrb[26].mxu0 %vm524_vm12, %v2138_v54 }
0x1392   :  { %6210 = vmatpush3.bf16.msra.mxu0 %v6486_v5  ;;  %5716 = vmatprep.mubr.msk.f32.mxu0 %vm6446_vm0, %v6447_v4 }
0x1393   :  { %6211 = vmatprep.subr.bf16.mxu0 %v6445_v0 }
0x1396   :  { %6213 = vmatpush3.bf16.msra.mxu0 %v6495_v7 }
0x1397   :  { %6214 = vmatprep.subr.bf16.mxu0 %v6445_v0 }
0x139a   :  { %6216 = vmatpush3.bf16.msra.mxu0 %v6507_v10 }
0x139b   :  { %5739 = vmatprep.subr.mxu0 %v6447_v4 }
0x139d   :  { %5717 = vmatmul.mubr.msk.f32.vlgmr.msra.gmra.mrb[28].mxu0 %vm36_vm1, %v2214_v56 }
0x139e   :  { %5741 = vmatprep.mubr.msk.f32.mxu0 %vm6446_vm0, %v6447_v4  ;;  %5740 = vmatpush3.msra.mxu0 %v2443_v8 }
0x139f   :  { %6226 = vmatprep.subr.bf16.mxu0 %v6445_v0 }
0x1464   :  { %v2207_v58 = vpop.f32.mrb[26].mxu0 }
0x1465   :  { %v2211_v59 = vadd.f32 %v2207_v58, %v2057_v48  ;;  %v5703_v60 = vpop.f32.mrb[27].mxu0 }
0x1470   :  { %v2284_v61 = vpop.f32.mrb[28].mxu0 }
0x1471   :  { %v2285_v62 = vadd.f32 %v6531_v12, %v2284_v61  ;;  %v5718_v63 = vpop.f32.mrb[29].mxu0 }
0x1473   :  { %6406 = vtanh.f32 %v2285_v62 }
0x147d   :  { %v6407_v1 = vpop.eup %6406 }
0x147e   :  { %2291 = vrot.lane.b32.xlu0 %v6407_v1, %s6448_s19  ;;  %v2368_v6 = vsel %vm30_vm5, %v5057_v3, %v6407_v1 }
0x14f0   :  { %v2292_v2 = vpop.permute.xlu0 %2291 }
0x14f1   :  { %5722 = vmatmul.mubr.msk.f32.vlgmr.msra.gmra.mrb[28].mxu1 %vm524_vm12, %v2292_v2  ;;  %v3213_v2 = vld [vmem:[%s7276_s2 + $0x90] sm:$0xff] }
0x14f2   :  { %6219 = vmatpush3.bf16.msra.mxu1 %v6486_v5  ;;  %5736 = vmatprep.mubr.msk.f32.mxu1 %vm6446_vm0, %v6447_v4 }
0x14f3   :  { %6220 = vmatprep.subr.bf16.mxu1 %v6445_v0 }
0x14f6   :  { %6222 = vmatpush3.bf16.msra.mxu1 %v6495_v7 }
0x14f7   :  { %6223 = vmatprep.subr.bf16.mxu1 %v6445_v0 }
0x14fa   :  { %6225 = vmatpush3.bf16.msra.mxu1 %v6507_v10 }
0x14fb   :  { %5759 = vmatprep.subr.mxu1 %v6447_v4 }
0x14fd   :  { %5737 = vmatmul.mubr.msk.f32.vlgmr.msra.gmra.mrb[30].mxu1 %vm36_vm1, %v2368_v6 }
0x14fe   :  { %5761 = vmatprep.mubr.msk.f32.mxu1 %vm6446_vm0, %v6447_v4  ;;  %5760 = vmatpush3.msra.mxu1 %v2597_v22 }
0x14ff   :  { %6235 = vmatprep.subr.bf16.mxu1 %v6445_v0 }
0x15c4   :  { %v2361_v9 = vpop.f32.mrb[28].mxu1 }
0x15c5   :  { %v2365_v11 = vadd.f32 %v2361_v9, %v2211_v59  ;;  %v5723_v13 = vpop.f32.mrb[29].mxu1 }
0x15d0   :  { %v2438_v14 = vpop.f32.mrb[30].mxu1 }
0x15d1   :  { %v2439_v15 = vadd.f32 %v6531_v12, %v2438_v14  ;;  %v5738_v16 = vpop.f32.mrb[31].mxu1 }
0x15d3   :  { %6408 = vtanh.f32 %v2439_v15 }
0x15dd   :  { %v6409_v18 = vpop.eup %6408 }
0x15de   :  { %2445 = vrot.lane.b32.xlu1 %v6409_v18, %s6448_s19  ;;  %v2522_v21 = vsel %vm30_vm5, %v5060_v20, %v6409_v18  ;;  %v5075_v18 = vld [vmem:[%s7275_s0 + $0xb8] sm:$0xff] }
0x15df   :  { %v3367_v20 = vld [vmem:[%s7276_s2 + $0x98] sm:$0xff] }
0x1650   :  { %v2446_v19 = vpop.permute.xlu1 %2445 }
0x1651   :  { %5742 = vmatmul.mubr.msk.f32.vlgmr.msra.gmra.mrb[30].mxu0 %vm524_vm12, %v2446_v19 }
0x1652   :  { %6228 = vmatpush3.bf16.msra.mxu0 %v6486_v5  ;;  %5756 = vmatprep.mubr.msk.f32.mxu0 %vm6446_vm0, %v6447_v4 }
0x1653   :  { %6229 = vmatprep.subr.bf16.mxu0 %v6445_v0 }
0x1656   :  { %6231 = vmatpush3.bf16.msra.mxu0 %v6495_v7 }
0x1657   :  { %6232 = vmatprep.subr.bf16.mxu0 %v6445_v0 }
0x165a   :  { %6234 = vmatpush3.bf16.msra.mxu0 %v6507_v10 }
0x165b   :  { %5779 = vmatprep.subr.mxu0 %v6447_v4 }
0x165d   :  { %5757 = vmatmul.mubr.msk.f32.vlgmr.msra.gmra.mrb[32].mxu0 %vm36_vm1, %v2522_v21 }
0x165e   :  { %5781 = vmatprep.mubr.msk.f32.mxu0 %vm6446_vm0, %v6447_v4  ;;  %5780 = vmatpush3.msra.mxu0 %v2751_v33 }
0x165f   :  { %6244 = vmatprep.subr.bf16.mxu0 %v6445_v0 }
0x1724   :  { %v2515_v23 = vpop.f32.mrb[30].mxu0 }
0x1725   :  { %v2519_v24 = vadd.f32 %v2515_v23, %v2365_v11  ;;  %v5743_v25 = vpop.f32.mrb[31].mxu0  ;;  %v7018_v11 = vld [vmem:[%s7274_s1 + $0x30] ss:$0 sm:$0xff] }
0x1730   :  { %v2592_v26 = vpop.f32.mrb[32].mxu0 }
0x1731   :  { %v2593_v27 = vadd.f32 %v6531_v12, %v2592_v26  ;;  %v5758_v28 = vpop.f32.mrb[33].mxu0 }
0x1733   :  { %6410 = vtanh.f32 %v2593_v27 }
0x173d   :  { %v6411_v29 = vpop.eup %6410 }
0x173e   :  { %2599 = vrot.lane.b32.xlu0 %v6411_v29, %s6448_s19  ;;  %v2676_v32 = vsel %vm30_vm5, %v5063_v31, %v6411_v29  ;;  %v5078_v29 = vld [vmem:[%s7275_s0 + $0xc0] sm:$0xff] }
0x173f   :  { %v3521_v31 = vld [vmem:[%s7276_s2 + $0xa0] sm:$0xff] }
0x17b0   :  { %v2600_v30 = vpop.permute.xlu0 %2599 }
0x17b1   :  { %5762 = vmatmul.mubr.msk.f32.vlgmr.msra.gmra.mrb[32].mxu1 %vm524_vm12, %v2600_v30 }
0x17b2   :  { %6237 = vmatpush3.bf16.msra.mxu1 %v6486_v5  ;;  %5776 = vmatprep.mubr.msk.f32.mxu1 %vm6446_vm0, %v6447_v4 }
0x17b3   :  { %6238 = vmatprep.subr.bf16.mxu1 %v6445_v0 }
0x17b6   :  { %6240 = vmatpush3.bf16.msra.mxu1 %v6495_v7 }
0x17b7   :  { %6241 = vmatprep.subr.bf16.mxu1 %v6445_v0 }
0x17ba   :  { %6243 = vmatpush3.bf16.msra.mxu1 %v6507_v10 }
0x17bb   :  { %5799 = vmatprep.subr.mxu1 %v6447_v4 }
0x17bd   :  { %5777 = vmatmul.mubr.msk.f32.vlgmr.msra.gmra.mrb[34].mxu1 %vm36_vm1, %v2676_v32 }
0x17be   :  { %5801 = vmatprep.mubr.msk.f32.mxu1 %vm6446_vm0, %v6447_v4  ;;  %5800 = vmatpush3.msra.mxu1 %v2905_v44 }
0x17bf   :  { %6253 = vmatprep.subr.bf16.mxu1 %v6445_v0 }
0x1884   :  { %v2669_v34 = vpop.f32.mrb[32].mxu1 }
0x1885   :  { %v2673_v35 = vadd.f32 %v2669_v34, %v2519_v24  ;;  %v5763_v36 = vpop.f32.mrb[33].mxu1 }
0x1890   :  { %v2746_v37 = vpop.f32.mrb[34].mxu1 }
0x1891   :  { %v2747_v38 = vadd.f32 %v6531_v12, %v2746_v37  ;;  %v5778_v39 = vpop.f32.mrb[35].mxu1 }
0x1893   :  { %6412 = vtanh.f32 %v2747_v38 }
0x189d   :  { %v6413_v40 = vpop.eup %6412 }
0x189e   :  { %2753 = vrot.lane.b32.xlu1 %v6413_v40, %s6448_s19  ;;  %v2830_v43 = vsel %vm30_vm5, %v5066_v42, %v6413_v40  ;;  %v5081_v40 = vld [vmem:[%s7275_s0 + $0xc8] sm:$0xff] }
0x189f   :  { %v3675_v42 = vld [vmem:[%s7276_s2 + $0xa8] sm:$0xff] }
0x1910   :  { %v2754_v41 = vpop.permute.xlu1 %2753 }
0x1911   :  { %5782 = vmatmul.mubr.msk.f32.vlgmr.msra.gmra.mrb[34].mxu0 %vm524_vm12, %v2754_v41 }
0x1912   :  { %6246 = vmatpush3.bf16.msra.mxu0 %v6486_v5  ;;  %5796 = vmatprep.mubr.msk.f32.mxu0 %vm6446_vm0, %v6447_v4 }
0x1913   :  { %6247 = vmatprep.subr.bf16.mxu0 %v6445_v0 }
0x1916   :  { %6249 = vmatpush3.bf16.msra.mxu0 %v6495_v7 }
0x1917   :  { %6250 = vmatprep.subr.bf16.mxu0 %v6445_v0 }
0x191a   :  { %6252 = vmatpush3.bf16.msra.mxu0 %v6507_v10 }
0x191b   :  { %5819 = vmatprep.subr.mxu0 %v6447_v4 }
0x191d   :  { %5797 = vmatmul.mubr.msk.f32.vlgmr.msra.gmra.mrb[36].mxu0 %vm36_vm1, %v2830_v43 }
0x191e   :  { %5821 = vmatprep.mubr.msk.f32.mxu0 %vm6446_vm0, %v6447_v4  ;;  %5820 = vmatpush3.msra.mxu0 %v3059_v55 }
0x191f   :  { %6262 = vmatprep.subr.bf16.mxu0 %v6445_v0 }
0x19e4   :  { %v2823_v45 = vpop.f32.mrb[34].mxu0 }
0x19e5   :  { %v2827_v46 = vadd.f32 %v2823_v45, %v2673_v35  ;;  %v5783_v47 = vpop.f32.mrb[35].mxu0 }
0x19f0   :  { %v2900_v48 = vpop.f32.mrb[36].mxu0 }
0x19f1   :  { %v2901_v49 = vadd.f32 %v6531_v12, %v2900_v48  ;;  %v5798_v50 = vpop.f32.mrb[37].mxu0 }
0x19f3   :  { %6414 = vtanh.f32 %v2901_v49 }
0x19fd   :  { %v6415_v51 = vpop.eup %6414 }
0x19fe   :  { %2907 = vrot.lane.b32.xlu0 %v6415_v51, %s6448_s19  ;;  %v2984_v54 = vsel %vm30_vm5, %v5069_v53, %v6415_v51  ;;  %v5084_v51 = vld [vmem:[%s7275_s0 + $0xd0] sm:$0xff] }
0x19ff   :  { %v3829_v53 = vld [vmem:[%s7276_s2 + $0xb0] sm:$0xff] }
0x1a70   :  { %v2908_v52 = vpop.permute.xlu0 %2907 }
0x1a71   :  { %5802 = vmatmul.mubr.msk.f32.vlgmr.msra.gmra.mrb[36].mxu1 %vm524_vm12, %v2908_v52 }
0x1a72   :  { %6255 = vmatpush3.bf16.msra.mxu1 %v6486_v5  ;;  %5816 = vmatprep.mubr.msk.f32.mxu1 %vm6446_vm0, %v6447_v4 }
0x1a73   :  { %6256 = vmatprep.subr.bf16.mxu1 %v6445_v0 }
0x1a76   :  { %6258 = vmatpush3.bf16.msra.mxu1 %v6495_v7 }
0x1a77   :  { %6259 = vmatprep.subr.bf16.mxu1 %v6445_v0 }
0x1a7a   :  { %6261 = vmatpush3.bf16.msra.mxu1 %v6507_v10 }
0x1a7b   :  { %5839 = vmatprep.subr.mxu1 %v6447_v4 }
0x1a7d   :  { %5817 = vmatmul.mubr.msk.f32.vlgmr.msra.gmra.mrb[38].mxu1 %vm36_vm1, %v2984_v54 }
0x1a7e   :  { %5841 = vmatprep.mubr.msk.f32.mxu1 %vm6446_vm0, %v6447_v4  ;;  %5840 = vmatpush3.msra.mxu1 %v3213_v2 }
0x1a7f   :  { %6271 = vmatprep.subr.bf16.mxu1 %v6445_v0 }
0x1b44   :  { %v2977_v56 = vpop.f32.mrb[36].mxu1 }
0x1b45   :  { %v2981_v57 = vadd.f32 %v2977_v56, %v2827_v46  ;;  %v5803_v58 = vpop.f32.mrb[37].mxu1 }
0x1b50   :  { %v3054_v59 = vpop.f32.mrb[38].mxu1 }
0x1b51   :  { %v3055_v60 = vadd.f32 %v6531_v12, %v3054_v59  ;;  %v5818_v61 = vpop.f32.mrb[39].mxu1  ;;  %v5072_v12 = vld [vmem:[%s7275_s0 + $0xb0] sm:$0xff] }
0x1b53   :  { %6416 = vtanh.f32 %v3055_v60 }
0x1b5d   :  { %v6417_v62 = vpop.eup %6416 }
0x1b5e   :  { %3061 = vrot.lane.b32.xlu1 %v6417_v62, %s6448_s19  ;;  %v3138_v1 = vsel %vm30_vm5, %v5072_v12, %v6417_v62  ;;  %v5087_v62 = vld [vmem:[%s7275_s0 + $0xd8] sm:$0xff] }
0x1b5f   :  { %v3983_v12 = vld [vmem:[%s7276_s2 + $0xb8] sm:$0xff] }
0x1bd0   :  { %v3062_v63 = vpop.permute.xlu1 %3061 }
0x1bd1   :  { %5822 = vmatmul.mubr.msk.f32.vlgmr.msra.gmra.mrb[38].mxu0 %vm524_vm12, %v3062_v63 }
0x1bd2   :  { %6264 = vmatpush3.bf16.msra.mxu0 %v6486_v5  ;;  %5836 = vmatprep.mubr.msk.f32.mxu0 %vm6446_vm0, %v6447_v4 }
0x1bd3   :  { %6265 = vmatprep.subr.bf16.mxu0 %v6445_v0 }
0x1bd6   :  { %6267 = vmatpush3.bf16.msra.mxu0 %v6495_v7 }
0x1bd7   :  { %6268 = vmatprep.subr.bf16.mxu0 %v6445_v0 }
0x1bda   :  { %6270 = vmatpush3.bf16.msra.mxu0 %v6507_v10 }
0x1bdb   :  { %5859 = vmatprep.subr.mxu0 %v6447_v4 }
0x1bdd   :  { %5837 = vmatmul.mubr.msk.f32.vlgmr.msra.gmra.mrb[40].mxu0 %vm36_vm1, %v3138_v1 }
0x1bde   :  { %5861 = vmatprep.mubr.msk.f32.mxu0 %vm6446_vm0, %v6447_v4  ;;  %5860 = vmatpush3.msra.mxu0 %v3367_v20 }
0x1bdf   :  { %6280 = vmatprep.subr.bf16.mxu0 %v6445_v0 }
0x1ca4   :  { %v3131_v3 = vpop.f32.mrb[38].mxu0 }
0x1ca5   :  { %v3135_v6 = vadd.f32 %v3131_v3, %v2981_v57  ;;  %v5823_v8 = vpop.f32.mrb[39].mxu0 }
0x1cb0   :  { %v3208_v9 = vpop.f32.mrb[40].mxu0 }
0x1cb1   :  { %v3209_v13 = vadd.f32 %v7018_v11, %v3208_v9  ;;  %v5838_v14 = vpop.f32.mrb[41].mxu0 }
0x1cb3   :  { %6418 = vtanh.f32 %v3209_v13 }
0x1cbd   :  { %v6419_v15 = vpop.eup %6418 }
0x1cbe   :  { %3215 = vrot.lane.b32.xlu0 %v6419_v15, %s6448_s19  ;;  %v3292_v19 = vsel %vm30_vm5, %v5075_v18, %v6419_v15  ;;  %v5090_v15 = vld [vmem:[%s7275_s0 + $0xe0] sm:$0xff] }
0x1cbf   :  { %v4137_v18 = vld [vmem:[%s7276_s2 + $0xc0] sm:$0xff] }
0x1d30   :  { %v3216_v16 = vpop.permute.xlu0 %3215 }
0x1d31   :  { %5842 = vmatmul.mubr.msk.f32.vlgmr.msra.gmra.mrb[40].mxu1 %vm524_vm12, %v3216_v16 }
0x1d32   :  { %6273 = vmatpush3.bf16.msra.mxu1 %v6486_v5  ;;  %5856 = vmatprep.mubr.msk.f32.mxu1 %vm6446_vm0, %v6447_v4 }
0x1d33   :  { %6274 = vmatprep.subr.bf16.mxu1 %v6445_v0 }
0x1d36   :  { %6276 = vmatpush3.bf16.msra.mxu1 %v6495_v7 }
0x1d37   :  { %6277 = vmatprep.subr.bf16.mxu1 %v6445_v0 }
0x1d3a   :  { %6279 = vmatpush3.bf16.msra.mxu1 %v6507_v10 }
0x1d3b   :  { %5879 = vmatprep.subr.mxu1 %v6447_v4 }
0x1d3d   :  { %5857 = vmatmul.mubr.msk.f32.vlgmr.msra.gmra.mrb[42].mxu1 %vm36_vm1, %v3292_v19 }
0x1d3e   :  { %5881 = vmatprep.mubr.msk.f32.mxu1 %vm6446_vm0, %v6447_v4  ;;  %5880 = vmatpush3.msra.mxu1 %v3521_v31 }
0x1d3f   :  { %6289 = vmatprep.subr.bf16.mxu1 %v6445_v0 }
0x1e04   :  { %v3285_v21 = vpop.f32.mrb[40].mxu1 }
0x1e05   :  { %v3289_v22 = vadd.f32 %v3285_v21, %v3135_v6  ;;  %v5843_v23 = vpop.f32.mrb[41].mxu1 }
0x1e10   :  { %v3362_v24 = vpop.f32.mrb[42].mxu1 }
0x1e11   :  { %v3363_v25 = vadd.f32 %v7018_v11, %v3362_v24  ;;  %v5858_v26 = vpop.f32.mrb[43].mxu1 }
0x1e13   :  { %6420 = vtanh.f32 %v3363_v25 }
0x1e1d   :  { %v6421_v27 = vpop.eup %6420 }
0x1e1e   :  { %3369 = vrot.lane.b32.xlu1 %v6421_v27, %s6448_s19  ;;  %v3446_v30 = vsel %vm30_vm5, %v5078_v29, %v6421_v27  ;;  %v5093_v27 = vld [vmem:[%s7275_s0 + $0xe8] sm:$0xff] }
0x1e1f   :  { %v4291_v29 = vld [vmem:[%s7276_s2 + $0xc8] sm:$0xff] }
0x1e90   :  { %v3370_v28 = vpop.permute.xlu1 %3369 }
0x1e91   :  { %5862 = vmatmul.mubr.msk.f32.vlgmr.msra.gmra.mrb[42].mxu0 %vm524_vm12, %v3370_v28 }
0x1e92   :  { %6282 = vmatpush3.bf16.msra.mxu0 %v6486_v5  ;;  %5876 = vmatprep.mubr.msk.f32.mxu0 %vm6446_vm0, %v6447_v4 }
0x1e93   :  { %6283 = vmatprep.subr.bf16.mxu0 %v6445_v0 }
0x1e96   :  { %6285 = vmatpush3.bf16.msra.mxu0 %v6495_v7 }
0x1e97   :  { %6286 = vmatprep.subr.bf16.mxu0 %v6445_v0 }
0x1e9a   :  { %6288 = vmatpush3.bf16.msra.mxu0 %v6507_v10 }
0x1e9b   :  { %5899 = vmatprep.subr.mxu0 %v6447_v4 }
0x1e9d   :  { %5877 = vmatmul.mubr.msk.f32.vlgmr.msra.gmra.mrb[44].mxu0 %vm36_vm1, %v3446_v30 }
0x1e9e   :  { %5901 = vmatprep.mubr.msk.f32.mxu0 %vm6446_vm0, %v6447_v4  ;;  %5900 = vmatpush3.msra.mxu0 %v3675_v42 }
0x1e9f   :  { %6298 = vmatprep.subr.bf16.mxu0 %v6445_v0 }
0x1f64   :  { %v3439_v32 = vpop.f32.mrb[42].mxu0 }
0x1f65   :  { %v3443_v33 = vadd.f32 %v3439_v32, %v3289_v22  ;;  %v5863_v34 = vpop.f32.mrb[43].mxu0 }
0x1f70   :  { %v3516_v35 = vpop.f32.mrb[44].mxu0 }
0x1f71   :  { %v3517_v36 = vadd.f32 %v7018_v11, %v3516_v35  ;;  %v5878_v37 = vpop.f32.mrb[45].mxu0 }
0x1f73   :  { %6422 = vtanh.f32 %v3517_v36 }
0x1f7d   :  { %v6423_v38 = vpop.eup %6422 }
0x1f7e   :  { %3523 = vrot.lane.b32.xlu0 %v6423_v38, %s6448_s19  ;;  %v3600_v41 = vsel %vm30_vm5, %v5081_v40, %v6423_v38  ;;  %v4441_v38 = vld [vmem:[%s7276_s2 + $0xd0] sm:$0xff] }
0x1ff0   :  { %v3524_v39 = vpop.permute.xlu0 %3523 }
0x1ff1   :  { %5882 = vmatmul.mubr.msk.f32.vlgmr.msra.gmra.mrb[44].mxu1 %vm524_vm12, %v3524_v39 }
0x1ff2   :  { %6291 = vmatpush3.bf16.msra.mxu1 %v6486_v5  ;;  %5896 = vmatprep.mubr.msk.f32.mxu1 %vm6446_vm0, %v6447_v4 }
0x1ff3   :  { %6292 = vmatprep.subr.bf16.mxu1 %v6445_v0 }
0x1ff6   :  { %6294 = vmatpush3.bf16.msra.mxu1 %v6495_v7 }
0x1ff7   :  { %6295 = vmatprep.subr.bf16.mxu1 %v6445_v0 }
0x1ffa   :  { %6297 = vmatpush3.bf16.msra.mxu1 %v6507_v10 }
0x1ffb   :  { %5919 = vmatprep.subr.mxu1 %v6447_v4 }
0x1ffd   :  { %5897 = vmatmul.mubr.msk.f32.vlgmr.msra.gmra.mrb[46].mxu1 %vm36_vm1, %v3600_v41 }
0x1ffe   :  { %5921 = vmatprep.mubr.msk.f32.mxu1 %vm6446_vm0, %v6447_v4  ;;  %5920 = vmatpush3.msra.mxu1 %v3829_v53 }
0x1fff   :  { %6307 = vmatprep.subr.bf16.mxu1 %v6445_v0 }
0x20c4   :  { %v3593_v43 = vpop.f32.mrb[44].mxu1 }
0x20c5   :  { %v3597_v44 = vadd.f32 %v3593_v43, %v3443_v33  ;;  %v5883_v45 = vpop.f32.mrb[45].mxu1 }
0x20d0   :  { %v3670_v46 = vpop.f32.mrb[46].mxu1 }
0x20d1   :  { %v3671_v47 = vadd.f32 %v7018_v11, %v3670_v46  ;;  %v5898_v48 = vpop.f32.mrb[47].mxu1 }
0x20d2   :  { %v4598_v48 = vld [vmem:[%s7276_s2 + $0xd8] sm:$0xff] }
0x20d3   :  { %6424 = vtanh.f32 %v3671_v47 }
0x20dd   :  { %v6425_v49 = vpop.eup %6424 }
0x20de   :  { %3677 = vrot.lane.b32.xlu1 %v6425_v49, %s6448_s19  ;;  %v3754_v52 = vsel %vm30_vm5, %v5084_v51, %v6425_v49 }
0x2150   :  { %v3678_v50 = vpop.permute.xlu1 %3677 }
0x2151   :  { %5902 = vmatmul.mubr.msk.f32.vlgmr.msra.gmra.mrb[46].mxu0 %vm524_vm12, %v3678_v50 }
0x2152   :  { %6300 = vmatpush3.bf16.msra.mxu0 %v6486_v5  ;;  %5916 = vmatprep.mubr.msk.f32.mxu0 %vm6446_vm0, %v6447_v4 }
0x2153   :  { %6301 = vmatprep.subr.bf16.mxu0 %v6445_v0 }
0x2156   :  { %6303 = vmatpush3.bf16.msra.mxu0 %v6495_v7 }
0x2157   :  { %6304 = vmatprep.subr.bf16.mxu0 %v6445_v0 }
0x215a   :  { %6306 = vmatpush3.bf16.msra.mxu0 %v6507_v10 }
0x215b   :  { %5939 = vmatprep.subr.mxu0 %v6447_v4 }
0x215d   :  { %5917 = vmatmul.mubr.msk.f32.vlgmr.msra.gmra.mrb[48].mxu0 %vm36_vm1, %v3754_v52 }
0x215e   :  { %5941 = vmatprep.mubr.msk.f32.mxu0 %vm6446_vm0, %v6447_v4  ;;  %5940 = vmatpush3.msra.mxu0 %v3983_v12 }
0x215f   :  { %6316 = vmatprep.subr.bf16.mxu0 %v6445_v0 }
0x2224   :  { %v3747_v54 = vpop.f32.mrb[46].mxu0 }
0x2225   :  { %v3751_v55 = vadd.f32 %v3747_v54, %v3597_v44  ;;  %v5903_v56 = vpop.f32.mrb[47].mxu0 }
0x2230   :  { %v3824_v57 = vpop.f32.mrb[48].mxu0 }
0x2231   :  { %v3825_v58 = vadd.f32 %v7018_v11, %v3824_v57  ;;  %v5918_v59 = vpop.f32.mrb[49].mxu0 }
0x2233   :  { %6426 = vtanh.f32 %v3825_v58  ;;  %v4754_v58 = vld [vmem:[%s7276_s2 + $0xe0] sm:$0xff] }
0x223d   :  { %v6427_v60 = vpop.eup %6426 }
0x223e   :  { %3831 = vrot.lane.b32.xlu0 %v6427_v60, %s6448_s19  ;;  %v3908_v63 = vsel %vm30_vm5, %v5087_v62, %v6427_v60 }
0x22b0   :  { %v3832_v61 = vpop.permute.xlu0 %3831 }
0x22b1   :  { %5922 = vmatmul.mubr.msk.f32.vlgmr.msra.gmra.mrb[48].mxu1 %vm524_vm12, %v3832_v61 }
0x22b2   :  { %6309 = vmatpush3.bf16.msra.mxu1 %v6486_v5  ;;  %5936 = vmatprep.mubr.msk.f32.mxu1 %vm6446_vm0, %v6447_v4 }
0x22b3   :  { %6310 = vmatprep.subr.bf16.mxu1 %v6445_v0 }
0x22b6   :  { %6312 = vmatpush3.bf16.msra.mxu1 %v6495_v7 }
0x22b7   :  { %6313 = vmatprep.subr.bf16.mxu1 %v6445_v0 }
0x22ba   :  { %6315 = vmatpush3.bf16.msra.mxu1 %v6507_v10 }
0x22bb   :  { %5959 = vmatprep.subr.mxu1 %v6447_v4 }
0x22bd   :  { %5937 = vmatmul.mubr.msk.f32.vlgmr.msra.gmra.mrb[50].mxu1 %vm36_vm1, %v3908_v63 }
0x22be   :  { %5961 = vmatprep.mubr.msk.f32.mxu1 %vm6446_vm0, %v6447_v4  ;;  %5960 = vmatpush3.msra.mxu1 %v4137_v18 }
0x22bf   :  { %6325 = vmatprep.subr.bf16.mxu1 %v6445_v0 }
0x2384   :  { %v3901_v1 = vpop.f32.mrb[48].mxu1 }
0x2385   :  { %v3905_v2 = vadd.f32 %v3901_v1, %v3751_v55  ;;  %v5923_v3 = vpop.f32.mrb[49].mxu1 }
0x2390   :  { %v3978_v6 = vpop.f32.mrb[50].mxu1 }
0x2391   :  { %v3979_v8 = vadd.f32 %v7018_v11, %v3978_v6  ;;  %v5938_v9 = vpop.f32.mrb[51].mxu1 }
0x2393   :  { %6428 = vtanh.f32 %v3979_v8 }
0x239d   :  { %v6429_v13 = vpop.eup %6428 }
0x239e   :  { %3985 = vrot.lane.b32.xlu1 %v6429_v13, %s6448_s19  ;;  %v4062_v16 = vsel %vm30_vm5, %v5090_v15, %v6429_v13  ;;  %v5104_v13 = vld [vmem:[%s7276_s2 + $0xf0] ss:$0 sm:$0xff] }
0x2410   :  { %v3986_v14 = vpop.permute.xlu1 %3985 }
0x2411   :  { %5942 = vmatmul.mubr.msk.f32.vlgmr.msra.gmra.mrb[50].mxu0 %vm524_vm12, %v3986_v14 }
0x2412   :  { %6318 = vmatpush3.bf16.msra.mxu0 %v6486_v5  ;;  %5956 = vmatprep.mubr.msk.f32.mxu0 %vm6446_vm0, %v6447_v4 }
0x2413   :  { %6319 = vmatprep.subr.bf16.mxu0 %v6445_v0 }
0x2416   :  { %6321 = vmatpush3.bf16.msra.mxu0 %v6495_v7 }
0x2417   :  { %6322 = vmatprep.subr.bf16.mxu0 %v6445_v0 }
0x241a   :  { %6324 = vmatpush3.bf16.msra.mxu0 %v6507_v10 }
0x241b   :  { %5979 = vmatprep.subr.mxu0 %v6447_v4 }
0x241d   :  { %5957 = vmatmul.mubr.msk.f32.vlgmr.msra.gmra.mrb[52].mxu0 %vm36_vm1, %v4062_v16 }
0x241e   :  { %5981 = vmatprep.mubr.msk.f32.mxu0 %vm6446_vm0, %v6447_v4  ;;  %5980 = vmatpush3.msra.mxu0 %v4291_v29 }
0x241f   :  { %6334 = vmatprep.subr.bf16.mxu0 %v6445_v0 }
0x24e4   :  { %v4055_v19 = vpop.f32.mrb[50].mxu0 }
0x24e5   :  { %v4059_v20 = vadd.f32 %v4055_v19, %v3905_v2  ;;  %v5943_v21 = vpop.f32.mrb[51].mxu0 }
0x24f0   :  { %v4132_v22 = vpop.f32.mrb[52].mxu0 }
0x24f1   :  { %v4133_v23 = vadd.f32 %v7018_v11, %v4132_v22  ;;  %v5958_v24 = vpop.f32.mrb[53].mxu0  ;;  %v5002_v22 = vstv %s7277_s3 }
0x24f3   :  { %6430 = vtanh.f32 %v4133_v23 }
0x24fd   :  { %v6431_v25 = vpop.eup %6430 }
0x24fe   :  { %4139 = vrot.lane.b32.xlu0 %v6431_v25, %s6448_s19  ;;  %v4216_v28 = vsel %vm30_vm5, %v5093_v27, %v6431_v25  ;;  %vm4832_vm5 = vmand %vm4831_vm4, %vm4519_vm14 }
0x2570   :  { %v4140_v26 = vpop.permute.xlu0 %4139 }
0x2571   :  { %5962 = vmatmul.mubr.msk.f32.vlgmr.msra.gmra.mrb[52].mxu1 %vm524_vm12, %v4140_v26 }
0x2572   :  { %6327 = vmatpush3.bf16.msra.mxu1 %v6486_v5  ;;  %5976 = vmatprep.mubr.msk.f32.mxu1 %vm6446_vm0, %v6447_v4 }
0x2573   :  { %6328 = vmatprep.subr.bf16.mxu1 %v6445_v0 }
0x2576   :  { %6330 = vmatpush3.bf16.msra.mxu1 %v6495_v7 }
0x2577   :  { %6331 = vmatprep.subr.bf16.mxu1 %v6445_v0 }
0x257a   :  { %6333 = vmatpush3.bf16.msra.mxu1 %v6507_v10 }
0x257b   :  { %5999 = vmatprep.subr.mxu1 %v6447_v4 }
0x257d   :  { %5977 = vmatmul.mubr.msk.f32.vlgmr.msra.gmra.mrb[54].mxu1 %vm36_vm1, %v4216_v28 }
0x257e   :  { %6001 = vmatprep.mubr.msk.f32.mxu1 %vm6446_vm0, %v6447_v4  ;;  %6000 = vmatpush3.msra.mxu1 %v4441_v38 }
0x257f   :  { %6343 = vmatprep.subr.bf16.mxu1 %v6445_v0 }
0x2644   :  { %v4209_v30 = vpop.f32.mrb[52].mxu1 }
0x2645   :  { %v4213_v31 = vadd.f32 %v4209_v30, %v4059_v20  ;;  %v5963_v32 = vpop.f32.mrb[53].mxu1 }
0x2650   :  { %v4286_v33 = vpop.f32.mrb[54].mxu1 }
0x2651   :  { %v4287_v34 = vadd.f32 %v7018_v11, %v4286_v33  ;;  %v5978_v35 = vpop.f32.mrb[55].mxu1 }
0x2653   :  { %6432 = vtanh.f32 %v4287_v34 }
0x265d   :  { %v6433_v36 = vpop.eup %6432 }
0x265e   :  { %4293 = vrot.lane.b32.xlu1 %v6433_v36, %s6448_s19 }
0x26d0   :  { %v4294_v37 = vpop.permute.xlu1 %4293 }
0x26d1   :  { %5982 = vmatmul.mubr.msk.f32.vlgmr.msra.gmra.mrb[54].mxu0 %vm524_vm12, %v4294_v37 }
0x26d2   :  { %6336 = vmatpush3.bf16.msra.mxu0 %v6486_v5  ;;  %5996 = vmatprep.mubr.msk.f32.mxu0 %vm6446_vm0, %v6447_v4 }
0x26d3   :  { %6337 = vmatprep.subr.bf16.mxu0 %v6445_v0 }
0x26d6   :  { %6339 = vmatpush3.bf16.msra.mxu0 %v6495_v7 }
0x26d7   :  { %6340 = vmatprep.subr.bf16.mxu0 %v6445_v0 }
0x26da   :  { %6342 = vmatpush3.bf16.msra.mxu0 %v6507_v10 }
0x26db   :  { %6019 = vmatprep.subr.mxu0 %v6447_v4 }
0x26dd   :  { %5997 = vmatmul.mubr.msk.f32.vlgmr.msra.gmra.mrb[56].mxu0 %vm36_vm1, %v6433_v36 }
0x26de   :  { %6021 = vmatprep.mubr.msk.f32.mxu0 %vm6446_vm0, %v6447_v4  ;;  %6020 = vmatpush3.msra.mxu0 %v4598_v48 }
0x26df   :  { %6352 = vmatprep.subr.bf16.mxu0 %v6445_v0 }
0x27a4   :  { %v4363_v39 = vpop.f32.mrb[54].mxu0 }
0x27a5   :  { %v4367_v40 = vadd.f32 %v4363_v39, %v4213_v31  ;;  %v5983_v41 = vpop.f32.mrb[55].mxu0 }
0x27b0   :  { %v4436_v42 = vpop.f32.mrb[56].mxu0 }
0x27b1   :  { %v4437_v43 = vadd.f32 %v7018_v11, %v4436_v42  ;;  %v5998_v44 = vpop.f32.mrb[57].mxu0 }
0x27b3   :  { %6434 = vtanh.f32 %v4437_v43 }
0x27bd   :  { %v6435_v45 = vpop.eup %6434 }
0x27be   :  { %4443 = vrot.lane.b32.xlu0 %v6435_v45, %s6448_s19  ;;  %v4523_v47 = vsel %vm4520_vm15, %v6435_v45, %v6433_v36 }
0x2830   :  { %v4444_v46 = vpop.permute.xlu0 %4443 }
0x2831   :  { %6002 = vmatmul.mubr.msk.f32.vlgmr.msra.gmra.mrb[56].mxu1 %vm524_vm12, %v4444_v46 }
0x2832   :  { %6345 = vmatpush3.bf16.msra.mxu1 %v6486_v5  ;;  %6016 = vmatprep.mubr.msk.f32.mxu1 %vm6446_vm0, %v6447_v4 }
0x2833   :  { %6346 = vmatprep.subr.bf16.mxu1 %v6445_v0 }
0x2836   :  { %6348 = vmatpush3.bf16.msra.mxu1 %v6495_v7 }
0x2837   :  { %6349 = vmatprep.subr.bf16.mxu1 %v6445_v0 }
0x283a   :  { %6351 = vmatpush3.bf16.msra.mxu1 %v6507_v10 }
0x283b   :  { %6039 = vmatprep.subr.mxu1 %v6447_v4 }
0x283d   :  { %6017 = vmatmul.mubr.msk.f32.vlgmr.msra.gmra.mrb[58].mxu1 %vm36_vm1, %v4523_v47 }
0x283e   :  { %6041 = vmatprep.mubr.msk.f32.mxu1 %vm6446_vm0, %v6447_v4  ;;  %6040 = vmatpush3.msra.mxu1 %v4754_v58 }
0x283f   :  { %6361 = vmatprep.subr.bf16.mxu1 %v6445_v0 }
0x2904   :  { %v4513_v49 = vpop.f32.mrb[56].mxu1 }
0x2905   :  { %v4517_v50 = vadd.f32 %v4513_v49, %v4367_v40  ;;  %v6003_v51 = vpop.f32.mrb[57].mxu1 }
0x2910   :  { %v4593_v52 = vpop.f32.mrb[58].mxu1 }
0x2911   :  { %v4594_v53 = vadd.f32 %v7018_v11, %v4593_v52  ;;  %v6018_v54 = vpop.f32.mrb[59].mxu1 }
0x2913   :  { %6436 = vtanh.f32 %v4594_v53 }
0x291d   :  { %v6437_v55 = vpop.eup %6436 }
0x291e   :  { %4600 = vrot.lane.b32.xlu1 %v6437_v55, %s6448_s19  ;;  %v4679_v57 = vsel %vm4676_vm3, %v6437_v55, %v4523_v47 }
0x2990   :  { %v4601_v56 = vpop.permute.xlu1 %4600 }
0x2991   :  { %6022 = vmatmul.mubr.msk.f32.vlgmr.msra.gmra.mrb[58].mxu0 %vm524_vm12, %v4601_v56 }
0x2992   :  { %6354 = vmatpush3.bf16.msra.mxu0 %v6486_v5  ;;  %6036 = vmatprep.mubr.msk.f32.mxu0 %vm6446_vm0, %v6447_v4 }
0x2993   :  { %6355 = vmatprep.subr.bf16.mxu0 %v6445_v0 }
0x2996   :  { %6357 = vmatpush3.bf16.msra.mxu0 %v6495_v7 }
0x2997   :  { %6358 = vmatprep.subr.bf16.mxu0 %v6445_v0 }
0x299a   :  { %6360 = vmatpush3.bf16.msra.mxu0 %v6507_v10 }
0x299b   :  { %6059 = vmatprep.subr.mxu0 %v6447_v4 }
0x299d   :  { %6037 = vmatmul.mubr.msk.f32.vlgmr.msra.gmra.mrb[60].mxu0 %vm36_vm1, %v4679_v57 }
0x299e   :  { %6061 = vmatprep.mubr.msk.f32.mxu0 %vm6446_vm0, %v6447_v4 }
0x2a64   :  { %v4670_v59 = vpop.f32.mrb[58].mxu0 }
0x2a65   :  { %v4674_v60 = vadd.f32 %v4670_v59, %v4517_v50  ;;  %v6023_v61 = vpop.f32.mrb[59].mxu0 }
0x2a70   :  { %v4749_v62 = vpop.f32.mrb[60].mxu0 }
0x2a71   :  { %v4750_v63 = vadd.f32 %v7018_v11, %v4749_v62  ;;  %v6038_v12 = vpop.f32.mrb[61].mxu0 }
0x2a73   :  { %6438 = vtanh.f32 %v4750_v63 }
0x2a7d   :  { %v6439_v1 = vpop.eup %6438 }
0x2a7e   :  { %4756 = vrot.lane.b32.xlu0 %v6439_v1, %s6448_s19  ;;  %v4835_v3 = vsel %vm4832_vm5, %v6439_v1, %v4679_v57 }
0x2af0   :  { %v4757_v2 = vpop.permute.xlu0 %4756 }
0x2af1   :  { %6042 = vmatmul.mubr.msk.f32.vlgmr.msra.gmra.mrb[60].mxu1 %vm524_vm12, %v4757_v2 }
0x2af2   :  { %6363 = vmatpush3.bf16.msra.mxu1 %v6486_v5  ;;  %6056 = vmatprep.mubr.msk.f32.mxu1 %vm6446_vm0, %v6447_v4  ;;  %v4910_v4 = vld [vmem:[%s7276_s2 + $0xe8] sm:$0xff]  ;;  %vm4998_vm0 = vcmask 523264  }
0x2af3   :  { %6364 = vmatprep.subr.bf16.mxu1 %v6445_v0  ;;  %6060 = vmatpush3.msra.mxu0 %v4910_v4 }
0x2af6   :  { %6366 = vmatpush3.bf16.msra.mxu1 %v6495_v7 }
0x2af7   :  { %6367 = vmatprep.subr.bf16.mxu1 %v6445_v0 }
0x2afa   :  { %6369 = vmatpush3.bf16.msra.mxu1 %v6507_v10 }
0x2afd   :  { %6057 = vmatmul.mubr.msk.f32.vlgmr.msra.gmra.mrb[62].mxu1 %vm36_vm1, %v4835_v3  ;;  %vm5004_vm1 = vcmask 7168  }
0x2bc4   :  { %v4826_v5 = vpop.f32.mrb[60].mxu1 }
0x2bc5   :  { %v4830_v6 = vadd.f32 %v4826_v5, %v4674_v60  ;;  %v6043_v7 = vpop.f32.mrb[61].mxu1 }
0x2bd0   :  { %v4905_v8 = vpop.f32.mrb[62].mxu1 }
0x2bd1   :  { %v4906_v9 = vadd.f32 %v7018_v11, %v4905_v8  ;;  %v6058_v0 = vpop.f32.mrb[63].mxu1  ;;  %v5105_v11 = vld [vmem:[%s7276_s2 + $0xf8] ss:$0 sm:$0xff] }
0x2bd3   :  { %6440 = vtanh.f32 %v4906_v9 }
0x2bdd   :  { %v6441_v17 = vpop.eup %6440 }
0x2bde   :  { %4912 = vrot.lane.b32.xlu1 %v6441_v17, %s6448_s19 }
0x2c50   :  { %v4913_v10 = vpop.permute.xlu1 %4912 }
0x2c51   :  { %6062 = vmatmul.mubr.msk.f32.vlgmr.msra.gmra.mrb[62].mxu0 %vm524_vm12, %v4913_v10 }
0x2d24   :  { %v4982_v14 = vpop.f32.mrb[62].mxu0 }
0x2d25   :  { %v4986_v15 = vadd.f32 %v4982_v14, %v4830_v6  ;;  %v6063_v16 = vpop.f32.mrb[63].mxu0 }
0x2d27   :  { %v4991_v18 = vadd.f32 %v5104_v13, %v4986_v15 }
0x2d29   :  { %6442 = vtanh.f32 %v4991_v18 }
0x2d33   :  { %v6443_v19 = vpop.eup %6442 }
0x2d34   :  { %v4997_v20 = vmul.f32 %v6443_v19, %v5105_v11 }
0x2d36   :  { %v4999_v21 = vsel %vm4998_vm0, %v4997_v20, 0.0 }
0x2d37   :  { %5000 = vadd.xlane.f32.xlu0 %v4999_v21 }
0x2dc4   :  { %v5001_v23 = vpop.xlane.xlu0 %5000 }
0x2dc5   :  { %v5003_v24 = vadd.f32 %v5002_v22, %v5001_v23 }
0x2dc7   :  { %5005 = vst.msk [vmem:[%s7278_s4] sm:$0xff] %vm5004_vm1, %v5003_v24 }

</bundles_post_ra>
